<compile_context>
chip_gen: v7x
topology: tpu7x:2x2x1
jax: 0.10.0
libtpu: 0.0.40
codegen_flags: <defaults>
</compile_context>

<pallas_src>
import functools
import numpy as np
import jax
import jax.numpy as jnp
from jax import lax
from jax.experimental import pallas as pl
from jax.experimental.pallas import tpu as pltpu

EPS = 1e-5   # nn.BatchNorm2d default


def _bilinear_matrix(n_in, n_out):
    """M s.t. out = M @ in reproduces torch Upsample(mode='bilinear', align_corners=True)."""
    M = np.zeros((n_out, n_in), dtype=np.float32)
    if n_in == 1:
        M[:, 0] = 1.0
        return M
    scale = (n_in - 1) / (n_out - 1)
    for i in range(n_out):
        src = i * scale
        i0 = min(int(np.floor(src)), n_in - 2)
        t = src - i0
        M[i, i0] += 1.0 - t
        M[i, i0 + 1] += t
    return M


# --------------------- fused Up kernel (upsample + concat + DoubleConv) ---------------------
def _up_double_conv_kernel(x2pz_ref, x1r_ref, whb3_ref, a2_ref, b1_ref,
                           bnp1_ref, m2_ref, bnp2_ref, out_ref, h1s_ref,
                           *, R, Rp, Hp, H, inv_count):
    f32 = jnp.float32
    bf16 = jnp.bfloat16

    # interior-row masks from iota (conv1-output row r' <-> final row r'-1; conv2 row r <-> r)
    yy1 = (lax.broadcasted_iota(jnp.int32, (Rp, 1), 0) + (Hp - 1)) % Hp
    mask1 = ((yy1 >= 1) & (yy1 <= H)).astype(f32)                         # (Rp, 1)
    yy2 = lax.broadcasted_iota(jnp.int32, (R, 1), 0) % Hp
    mask2 = ((yy2 >= 1) & (yy2 <= H)).astype(f32)                         # (R, 1)

    def bn_relu(acc, bnp_ref, mask):
        # BN (training-mode batch statistics) in ONE masked pass, all stats math in f32.
        gamma_b = bnp_ref[0:1, :]                                         # (1, L)
        beta_b = bnp_ref[1:2, :]                                          # (1, L)
        gmat = bnp_ref[2:, :]                                             # (C, L) gather/broadcast
        am = acc * mask
        s_ss = jnp.concatenate([jnp.sum(am, axis=0, keepdims=True),
                                jnp.sum(am * acc, axis=0, keepdims=True)], axis=0)   # (2, L)
        chan = lax.dot_general(s_ss, gmat, (((1,), (1,)), ((), ())),
                               preferred_element_type=f32)                # (2, C)
        mean = chan[0:1] * inv_count
        var = jnp.maximum(chan[1:2] * inv_count - mean * mean, 0.0)
        mv = jnp.dot(jnp.concatenate([mean, var], axis=0), gmat,
                     preferred_element_type=f32)                          # (2, L)
        y = (acc - mv[0:1]) * (gamma_b * lax.rsqrt(mv[1:2] + EPS)) + beta_b
        return jnp.maximum(y, 0.0)

    # ---- conv1: upsample(x1) + pad + cat([x2, x1]) folded into per-ky banded matrices ----
    # ky taps are offset LOADS from the input refs (no vreg row relayouts).
    x1v = x1r_ref[...]                                                    # (N*H1, W1*C1) bf16
    acc1 = None
    for dy in range(3):
        t = jnp.dot(x2pz_ref[dy:dy + Rp, :], a2_ref[dy],
                    preferred_element_type=f32)                           # x2 path, K = W*C2
        acc1 = t if acc1 is None else acc1 + t
        xu = jnp.dot(whb3_ref[dy], x1v, preferred_element_type=f32).astype(bf16)   # y-upsample
        acc1 = acc1 + jnp.dot(xu, b1_ref[dy], preferred_element_type=f32)          # x1 path
    # acc1: (Rp, W*Cmid) f32

    # BN1 + ReLU; ring/guard rows re-zeroed (they are conv2's zero y-padding), then one
    # aligned full store into the row-padded scratch -> conv2 taps are offset loads.
    h1 = bn_relu(acc1, bnp1_ref, mask1) * mask1
    h1s_ref[...] = h1.astype(h1s_ref.dtype)

    # ---- conv2 -> BN2 -> ReLU, lane-dense (W*Cout = 128) output, single unmasked store ----
    acc2 = jnp.dot(h1s_ref[0:R, :], m2_ref[0], preferred_element_type=f32)
    acc2 = acc2 + jnp.dot(h1s_ref[1:R + 1, :], m2_ref[1], preferred_element_type=f32)
    acc2 = acc2 + jnp.dot(h1s_ref[2:R + 2, :], m2_ref[2], preferred_element_type=f32)
    out_ref[...] = bn_relu(acc2, bnp2_ref, mask2)


# --------------------------- host-side constants (cached / one-shot) ---------------------------
@functools.lru_cache(maxsize=None)
def _shape_constants(N, C1, H1, W1, C2, H, W):
    Hp = H + 2
    R = N * Hp
    Rp = R + 2
    S = R + 4
    Hu, Wu = 2 * H1, 2 * W1
    pt, plft = (H - Hu) // 2, (W - Wu) // 2

    wh = _bilinear_matrix(H1, Hu)                      # (Hu, H1) y-upsample
    ww = _bilinear_matrix(W1, Wu)                      # (Wu, W1) x-upsample

    # row-map: y-upsample + top/bottom pad + per-image placement into the
    # [guard, guard, (ring, H, ring) * N, guard, guard] input-row space; pre-shifted per ky.
    whb = np.zeros((S, N * H1), np.float32)
    for n in range(N):
        for y in range(max(0, pt), min(H, pt + Hu)):
            whb[n * Hp + 3 + y, n * H1:(n + 1) * H1] = wh[y - pt]
    whb3 = np.stack([whb[dy:dy + Rp] for dy in range(3)])       # (3, Rp, N*H1)

    # x-band selector with implicit zero x-padding (out-of-range dx taps omitted)
    E = np.zeros((3, W, W), np.float32)
    for dx in range(3):
        for x in range(W):
            xs = x + dx - 1
            if 0 <= xs < W:
                E[dx, xs, x] = 1.0

    # x-upsample + left/right pad, expressed over the W output columns
    ww_pad = np.zeros((W, W1), np.float32)
    lo, hi = max(0, plft), min(W, plft + Wu)
    ww_pad[lo:hi] = ww[lo - plft:hi - plft]
    return whb3, E, ww_pad


def prepare_up(params, x1_shape, x2_shape, const_dtype=jnp.bfloat16):
    """Fold weights + layout maps once per weight set (outside jit)."""
    N, C1, H1, W1 = x1_shape
    _, C2, H, W = x2_shape
    w1 = np.asarray(params["w1"], np.float32)          # (Cmid, Cin, 3, 3), Cin = C2 + C1
    w2 = np.asarray(params["w2"], np.float32)          # (Cout, Cmid, 3, 3)
    Cmid, Cout = w1.shape[0], w2.shape[0]
    whb3, E, ww_pad = _shape_constants(N, C1, H1, W1, C2, H, W)

    # A2[ky]: (W*C2, W*Cmid)  = x2 lane placement  o  conv1 ky tap  (ring-free, K = W*C2)
    # B1[ky]: (W1*C1, W*Cmid) = x-upsample + pad   o  conv1 ky tap  (ring-free, K = W1*C1)
    # M2[ky]: (W*Cmid, W*Cout)= conv2 ky tap
    A2 = np.stack([sum(np.kron(E[dx], w1[:, :C2, dy, dx].T) for dx in range(3))
                   for dy in range(3)])
    B1 = np.stack([sum(np.kron(ww_pad.T @ E[dx], w1[:, C2:, dy, dx].T) for dx in range(3))
                   for dy in range(3)])
    M2 = np.stack([sum(np.kron(E[dx], w2[:, :, dy, dx].T) for dx in range(3))
                   for dy in range(3)])

    # BN params packed per conv: rows = [gamma broadcast; beta broadcast; channel gather].
    # Conv biases omitted: exactly cancelled by the batch-mean subtraction (training-mode BN).
    def bn_pack(gamma, beta, C):
        return np.concatenate([np.tile(np.asarray(gamma, np.float32), W)[None],
                               np.tile(np.asarray(beta, np.float32), W)[None],
                               np.tile(np.eye(C, dtype=np.float32), W)], axis=0)

    return dict(
        whb3=jnp.asarray(whb3, const_dtype),
        A2=jnp.asarray(A2, const_dtype),
        B1=jnp.asarray(B1, const_dtype),
        M2=jnp.asarray(M2, const_dtype),
        bnp1=jnp.asarray(bn_pack(params["g1"], params["be1"], Cmid), jnp.float32),
        bnp2=jnp.asarray(bn_pack(params["g2"], params["be2"], Cout), jnp.float32),
    )


# --------------------------------- Up.forward wrapper ---------------------------------
@jax.jit
def up_forward(x1, x2, prepared):
    N, C1, H1, W1 = x1.shape
    _, C2, H, W = x2.shape
    Hp = H + 2
    R = N * Hp
    Rp = R + 2
    W_Cmid = prepared["A2"].shape[2]
    W_Cout = prepared["M2"].shape[2]
    Cout = W_Cout // W
    cdt = prepared["A2"].dtype

    # rows = (n, padded_y) with 2 guard rows each side; lanes = (x, c) NHWC, lane-dense
    x2pz = jnp.pad(jnp.transpose(x2, (0, 2, 3, 1)),
                   ((0, 0), (1, 1), (0, 0), (0, 0))).reshape(R, W * C2)
    x2pz = jnp.pad(x2pz, ((2, 2), (0, 0))).astype(cdt)                    # (R+4, W*C2)
    x1r = jnp.transpose(x1, (0, 2, 3, 1)).reshape(N * H1, W1 * C1).astype(cdt)

    kernel = functools.partial(_up_double_conv_kernel, R=R, Rp=Rp, Hp=Hp, H=H,
                               inv_count=float(1.0 / (N * H * W)))
    args = (x2pz, x1r, prepared["whb3"], prepared["A2"], prepared["B1"],
            prepared["bnp1"], prepared["M2"], prepared["bnp2"])

    def full(shape):
        nd = len(shape)
        return pl.BlockSpec(shape, lambda *_: (0,) * nd)

    out_flat = pl.pallas_call(
        kernel,
        out_shape=jax.ShapeDtypeStruct((R, W_Cout), jnp.float32),
        grid=(1,),
        in_specs=[full(a.shape) for a in args],
        out_specs=full((R, W_Cout)),
        scratch_shapes=[pltpu.VMEM((Rp, W_Cmid), cdt)],     # row-padded conv1 output
        compiler_params=pltpu.CompilerParams(dimension_semantics=("arbitrary",)),
    )(*args)

    out = out_flat.reshape(N, Hp, W, Cout)[:, 1:1 + H, :, :]
    return jnp.transpose(out, (0, 3, 1, 2))                 # back to NCHW (skip if NHWC is OK)


# ---------------- pure-JAX reference (sanity check only, float32) ----------------
def up_forward_ref(x1, x2, params):
    N, C1, H1, W1 = x1.shape
    _, _, H, W = x2.shape
    wh = jnp.asarray(_bilinear_matrix(H1, 2 * H1))
    wwt = jnp.asarray(_bilinear_matrix(W1, 2 * W1).T)
    xu = jnp.einsum("hk,nckl,lw->nchw", wh, x1, wwt)
    dY, dX = H - xu.shape[2], W - xu.shape[3]
    xu = jnp.pad(xu, ((0, 0), (0, 0), (dY // 2, dY - dY // 2), (dX // 2, dX - dX // 2)))
    x = jnp.concatenate([x2, xu], axis=1)

    def conv_bn_relu(x, w, b, g, be):
        y = lax.conv_general_dilated(x, w, (1, 1), "SAME",
                                     dimension_numbers=("NCHW", "OIHW", "NCHW"))
        y = y + b[None, :, None, None]
        mean = jnp.mean(y, axis=(0, 2, 3), keepdims=True)
        var = jnp.mean((y - mean) ** 2, axis=(0, 2, 3), keepdims=True)
        y = (y - mean) * lax.rsqrt(var + EPS) * g[None, :, None, None] + be[None, :, None, None]
        return jnp.maximum(y, 0.0)

    h = conv_bn_relu(x, params["w1"], params["b1"], params["g1"], params["be1"])
    return conv_bn_relu(h, params["w2"], params["b2"], params["g2"], params["be2"])


if __name__ == "__main__":
    # Up(in_channels=8, out_channels=8, bilinear=True): x1 has 4 ch at half res,
    # x2 has 4 ch at full res, DoubleConv(8 -> mid=4 -> 8), BN in training mode.
    N, C1, H1, W1 = 2, 4, 8, 8
    C2, H, W = 4, 16, 16
    Cin, Cmid, Cout = C1 + C2, (C1 + C2) // 2, 8

    key = jax.random.PRNGKey(0)
    ks = jax.random.split(key, 10)
    x1 = jax.random.normal(ks[0], (N, C1, H1, W1), jnp.float32)
    x2 = jax.random.normal(ks[1], (N, C2, H, W), jnp.float32)

    params = dict(
        w1=jax.random.normal(ks[2], (Cmid, Cin, 3, 3), jnp.float32) * 0.2,
        b1=jax.random.normal(ks[3], (Cmid,), jnp.float32) * 0.1,
        g1=1.0 + 0.1 * jax.random.normal(ks[4], (Cmid,), jnp.float32),
        be1=0.1 * jax.random.normal(ks[5], (Cmid,), jnp.float32),
        w2=jax.random.normal(ks[6], (Cout, Cmid, 3, 3), jnp.float32) * 0.2,
        b2=jax.random.normal(ks[7], (Cout,), jnp.float32) * 0.1,
        g2=1.0 + 0.1 * jax.random.normal(ks[8], (Cout,), jnp.float32),
        be2=0.1 * jax.random.normal(ks[9], (Cout,), jnp.float32),
    )

    prepared = prepare_up(params, x1.shape, x2.shape)        # one-time weight folding
    out = jax.block_until_ready(up_forward(x1, x2, prepared))
    ref = jax.block_until_ready(up_forward_ref(x1, x2, params))
    assert out.shape == (N, Cout, H, W), out.shape
    err = float(jnp.max(jnp.abs(out - ref)))
    # bf16 matmul operands vs a pure-f32 reference -> relaxed absolute tolerance
    # (structural bugs produce O(0.3+) errors; observed bf16 error is ~1e-2 level).
    if not np.isfinite(err) or err > 8e-2:
        raise SystemExit(f"mismatch vs reference: max abs err = {err}")
    print("KERNEL_OK")
</pallas_src>

<mosaic_0001>
module attributes {stable_mosaic.version = 11 : i64} {
  func.func @_up_double_conv_kernel(%arg0: i32, %arg1: memref<40x64xbf16, #tpu.memory_space<vmem>>, %arg2: memref<16x32xbf16, #tpu.memory_space<vmem>>, %arg3: memref<3x38x16xbf16, #tpu.memory_space<vmem>>, %arg4: memref<3x64x64xbf16, #tpu.memory_space<vmem>>, %arg5: memref<3x32x64xbf16, #tpu.memory_space<vmem>>, %arg6: memref<6x64xf32, #tpu.memory_space<vmem>>, %arg7: memref<3x64x128xbf16, #tpu.memory_space<vmem>>, %arg8: memref<10x128xf32, #tpu.memory_space<vmem>>, %arg9: memref<36x128xf32, #tpu.memory_space<vmem>>, %arg10: memref<38x64xbf16, #tpu.memory_space<vmem>>) attributes {dimension_semantics = [#tpu.dimension_semantics<arbitrary>], iteration_bounds = array<i64: 1>, scalar_prefetch = 0 : i64, scratch_operands = 1 : i64, tpu.core_type = #tpu.core_type<tc>, window_params = [{pipeline_mode = #tpu.pipeline_mode<synchronous>, transform_indices = @transform_0, window_bounds = array<i64: 40, 64>}, {pipeline_mode = #tpu.pipeline_mode<synchronous>, transform_indices = @transform_1, window_bounds = array<i64: 16, 32>}, {pipeline_mode = #tpu.pipeline_mode<synchronous>, transform_indices = @transform_2, window_bounds = array<i64: 3, 38, 16>}, {pipeline_mode = #tpu.pipeline_mode<synchronous>, transform_indices = @transform_3, window_bounds = array<i64: 3, 64, 64>}, {pipeline_mode = #tpu.pipeline_mode<synchronous>, transform_indices = @transform_4, window_bounds = array<i64: 3, 32, 64>}, {pipeline_mode = #tpu.pipeline_mode<synchronous>, transform_indices = @transform_5, window_bounds = array<i64: 6, 64>}, {pipeline_mode = #tpu.pipeline_mode<synchronous>, transform_indices = @transform_6, window_bounds = array<i64: 3, 64, 128>}, {pipeline_mode = #tpu.pipeline_mode<synchronous>, transform_indices = @transform_7, window_bounds = array<i64: 10, 128>}, {pipeline_mode = #tpu.pipeline_mode<synchronous>, transform_indices = @transform_8, window_bounds = array<i64: 36, 128>}]} {
    %0 = tpu.iota {dimensions = array<i32: 0>} : vector<38x1xi32>
    %c17_i32 = arith.constant 17 : i32
    %1 = vector.broadcast %c17_i32 : i32 to vector<38x1xi32>
    %2 = arith.addi %0, %1 : vector<38x1xi32>
    %c18_i32 = arith.constant 18 : i32
    %c0_i32 = arith.constant 0 : i32
    %3 = arith.cmpi eq, %c18_i32, %c0_i32 : i32
    %c1_i32 = arith.constant 1 : i32
    %4 = arith.select %3, %c1_i32, %c18_i32 : i32
    %5 = vector.broadcast %4 : i32 to vector<38x1xi32>
    %6 = arith.remsi %2, %5 : vector<38x1xi32>
    %c0_i32_0 = arith.constant 0 : i32
    %7 = vector.broadcast %c0_i32_0 : i32 to vector<38x1xi32>
    %8 = arith.cmpi ne, %6, %7 : vector<38x1xi32>
    %c0_i32_1 = arith.constant 0 : i32
    %9 = vector.broadcast %c0_i32_1 : i32 to vector<38x1xi32>
    %10 = arith.cmpi slt, %6, %9 : vector<38x1xi32>
    %c0_i32_2 = arith.constant 0 : i32
    %11 = arith.cmpi slt, %4, %c0_i32_2 : i32
    %12 = vector.broadcast %11 : i1 to vector<38x1xi1>
    %13 = vector.broadcast %12 : vector<38x1xi1> to vector<38x1xi1>
    %14 = arith.xori %10, %13 : vector<38x1xi1>
    %15 = arith.andi %14, %8 : vector<38x1xi1>
    %16 = vector.broadcast %4 : i32 to vector<38x1xi32>
    %17 = arith.addi %6, %16 : vector<38x1xi32>
    %18 = arith.select %15, %17, %6 : vector<38x1xi1>, vector<38x1xi32>
    %c1_i32_3 = arith.constant 1 : i32
    %19 = vector.broadcast %c1_i32_3 : i32 to vector<38x1xi32>
    %20 = arith.cmpi sge, %18, %19 : vector<38x1xi32>
    %c16_i32 = arith.constant 16 : i32
    %21 = vector.broadcast %c16_i32 : i32 to vector<38x1xi32>
    %22 = arith.cmpi sle, %18, %21 : vector<38x1xi32>
    %23 = arith.andi %20, %22 : vector<38x1xi1>
    %24 = arith.extui %23 : vector<38x1xi1> to vector<38x1xi32>
    %25 = arith.sitofp %24 : vector<38x1xi32> to vector<38x1xf32>
    %26 = tpu.iota {dimensions = array<i32: 0>} : vector<36x1xi32>
    %c18_i32_4 = arith.constant 18 : i32
    %c0_i32_5 = arith.constant 0 : i32
    %27 = arith.cmpi eq, %c18_i32_4, %c0_i32_5 : i32
    %c1_i32_6 = arith.constant 1 : i32
    %28 = arith.select %27, %c1_i32_6, %c18_i32_4 : i32
    %29 = vector.broadcast %28 : i32 to vector<36x1xi32>
    %30 = arith.remsi %26, %29 : vector<36x1xi32>
    %c0_i32_7 = arith.constant 0 : i32
    %31 = vector.broadcast %c0_i32_7 : i32 to vector<36x1xi32>
    %32 = arith.cmpi ne, %30, %31 : vector<36x1xi32>
    %c0_i32_8 = arith.constant 0 : i32
    %33 = vector.broadcast %c0_i32_8 : i32 to vector<36x1xi32>
    %34 = arith.cmpi slt, %30, %33 : vector<36x1xi32>
    %c0_i32_9 = arith.constant 0 : i32
    %35 = arith.cmpi slt, %28, %c0_i32_9 : i32
    %36 = vector.broadcast %35 : i1 to vector<36x1xi1>
    %37 = vector.broadcast %36 : vector<36x1xi1> to vector<36x1xi1>
    %38 = arith.xori %34, %37 : vector<36x1xi1>
    %39 = arith.andi %38, %32 : vector<36x1xi1>
    %40 = vector.broadcast %28 : i32 to vector<36x1xi32>
    %41 = arith.addi %30, %40 : vector<36x1xi32>
    %42 = arith.select %39, %41, %30 : vector<36x1xi1>, vector<36x1xi32>
    %c1_i32_10 = arith.constant 1 : i32
    %43 = vector.broadcast %c1_i32_10 : i32 to vector<36x1xi32>
    %44 = arith.cmpi sge, %42, %43 : vector<36x1xi32>
    %c16_i32_11 = arith.constant 16 : i32
    %45 = vector.broadcast %c16_i32_11 : i32 to vector<36x1xi32>
    %46 = arith.cmpi sle, %42, %45 : vector<36x1xi32>
    %47 = arith.andi %44, %46 : vector<36x1xi1>
    %48 = arith.extui %47 : vector<36x1xi1> to vector<36x1xi32>
    %49 = arith.sitofp %48 : vector<36x1xi32> to vector<36x1xf32>
    %c0 = arith.constant 0 : index
    %c0_12 = arith.constant 0 : index
    %50 = vector.load %arg2[%c0, %c0_12] : memref<16x32xbf16, #tpu.memory_space<vmem>>, vector<16x32xbf16>
    %c0_13 = arith.constant 0 : index
    %c0_14 = arith.constant 0 : index
    %51 = vector.load %arg1[%c0_13, %c0_14] : memref<40x64xbf16, #tpu.memory_space<vmem>>, vector<38x64xbf16>
    %c0_15 = arith.constant 0 : index
    %c0_16 = arith.constant 0 : index
    %c0_17 = arith.constant 0 : index
    %52 = vector.load %arg4[%c0_15, %c0_16, %c0_17] : memref<3x64x64xbf16, #tpu.memory_space<vmem>>, vector<1x64x64xbf16>
    %53 = vector.shape_cast %52 : vector<1x64x64xbf16> to vector<64x64xbf16>
    %cst = arith.constant dense<0.000000e+00> : vector<38x64xf32>
    %54 = tpu.matmul %51, %53, %cst {dimension_numbers = #tpu.dot_dimension_numbers<[1], [0], [0], [1], [0, 0, 1, 1], [], []>} : vector<38x64xbf16>, vector<64x64xbf16>, vector<38x64xf32> -> vector<38x64xf32>
    %c0_18 = arith.constant 0 : index
    %c0_19 = arith.constant 0 : index
    %c0_20 = arith.constant 0 : index
    %55 = vector.load %arg3[%c0_18, %c0_19, %c0_20] : memref<3x38x16xbf16, #tpu.memory_space<vmem>>, vector<1x38x16xbf16>
    %56 = vector.shape_cast %55 : vector<1x38x16xbf16> to vector<38x16xbf16>
    %cst_21 = arith.constant dense<0.000000e+00> : vector<38x32xf32>
    %57 = tpu.matmul %56, %50, %cst_21 {dimension_numbers = #tpu.dot_dimension_numbers<[1], [0], [0], [1], [0, 0, 1, 1], [], []>} : vector<38x16xbf16>, vector<16x32xbf16>, vector<38x32xf32> -> vector<38x32xf32>
    %58 = arith.truncf %57 : vector<38x32xf32> to vector<38x32xbf16>
    %c0_22 = arith.constant 0 : index
    %c0_23 = arith.constant 0 : index
    %c0_24 = arith.constant 0 : index
    %59 = vector.load %arg5[%c0_22, %c0_23, %c0_24] : memref<3x32x64xbf16, #tpu.memory_space<vmem>>, vector<1x32x64xbf16>
    %60 = vector.shape_cast %59 : vector<1x32x64xbf16> to vector<32x64xbf16>
    %cst_25 = arith.constant dense<0.000000e+00> : vector<38x64xf32>
    %61 = tpu.matmul %58, %60, %cst_25 {dimension_numbers = #tpu.dot_dimension_numbers<[1], [0], [0], [1], [0, 0, 1, 1], [], []>} : vector<38x32xbf16>, vector<32x64xbf16>, vector<38x64xf32> -> vector<38x64xf32>
    %62 = arith.addf %54, %61 : vector<38x64xf32>
    %c1 = arith.constant 1 : index
    %c0_26 = arith.constant 0 : index
    %63 = vector.load %arg1[%c1, %c0_26] : memref<40x64xbf16, #tpu.memory_space<vmem>>, vector<38x64xbf16>
    %c1_27 = arith.constant 1 : index
    %c0_28 = arith.constant 0 : index
    %c0_29 = arith.constant 0 : index
    %64 = vector.load %arg4[%c1_27, %c0_28, %c0_29] : memref<3x64x64xbf16, #tpu.memory_space<vmem>>, vector<1x64x64xbf16>
    %65 = vector.shape_cast %64 : vector<1x64x64xbf16> to vector<64x64xbf16>
    %cst_30 = arith.constant dense<0.000000e+00> : vector<38x64xf32>
    %66 = tpu.matmul %63, %65, %cst_30 {dimension_numbers = #tpu.dot_dimension_numbers<[1], [0], [0], [1], [0, 0, 1, 1], [], []>} : vector<38x64xbf16>, vector<64x64xbf16>, vector<38x64xf32> -> vector<38x64xf32>
    %67 = arith.addf %62, %66 : vector<38x64xf32>
    %c1_31 = arith.constant 1 : index
    %c0_32 = arith.constant 0 : index
    %c0_33 = arith.constant 0 : index
    %68 = vector.load %arg3[%c1_31, %c0_32, %c0_33] : memref<3x38x16xbf16, #tpu.memory_space<vmem>>, vector<1x38x16xbf16>
    %69 = vector.shape_cast %68 : vector<1x38x16xbf16> to vector<38x16xbf16>
    %cst_34 = arith.constant dense<0.000000e+00> : vector<38x32xf32>
    %70 = tpu.matmul %69, %50, %cst_34 {dimension_numbers = #tpu.dot_dimension_numbers<[1], [0], [0], [1], [0, 0, 1, 1], [], []>} : vector<38x16xbf16>, vector<16x32xbf16>, vector<38x32xf32> -> vector<38x32xf32>
    %71 = arith.truncf %70 : vector<38x32xf32> to vector<38x32xbf16>
    %c1_35 = arith.constant 1 : index
    %c0_36 = arith.constant 0 : index
    %c0_37 = arith.constant 0 : index
    %72 = vector.load %arg5[%c1_35, %c0_36, %c0_37] : memref<3x32x64xbf16, #tpu.memory_space<vmem>>, vector<1x32x64xbf16>
    %73 = vector.shape_cast %72 : vector<1x32x64xbf16> to vector<32x64xbf16>
    %cst_38 = arith.constant dense<0.000000e+00> : vector<38x64xf32>
    %74 = tpu.matmul %71, %73, %cst_38 {dimension_numbers = #tpu.dot_dimension_numbers<[1], [0], [0], [1], [0, 0, 1, 1], [], []>} : vector<38x32xbf16>, vector<32x64xbf16>, vector<38x64xf32> -> vector<38x64xf32>
    %75 = arith.addf %67, %74 : vector<38x64xf32>
    %c2 = arith.constant 2 : index
    %c0_39 = arith.constant 0 : index
    %76 = vector.load %arg1[%c2, %c0_39] : memref<40x64xbf16, #tpu.memory_space<vmem>>, vector<38x64xbf16>
    %c2_40 = arith.constant 2 : index
    %c0_41 = arith.constant 0 : index
    %c0_42 = arith.constant 0 : index
    %77 = vector.load %arg4[%c2_40, %c0_41, %c0_42] : memref<3x64x64xbf16, #tpu.memory_space<vmem>>, vector<1x64x64xbf16>
    %78 = vector.shape_cast %77 : vector<1x64x64xbf16> to vector<64x64xbf16>
    %cst_43 = arith.constant dense<0.000000e+00> : vector<38x64xf32>
    %79 = tpu.matmul %76, %78, %cst_43 {dimension_numbers = #tpu.dot_dimension_numbers<[1], [0], [0], [1], [0, 0, 1, 1], [], []>} : vector<38x64xbf16>, vector<64x64xbf16>, vector<38x64xf32> -> vector<38x64xf32>
    %80 = arith.addf %75, %79 : vector<38x64xf32>
    %c2_44 = arith.constant 2 : index
    %c0_45 = arith.constant 0 : index
    %c0_46 = arith.constant 0 : index
    %81 = vector.load %arg3[%c2_44, %c0_45, %c0_46] : memref<3x38x16xbf16, #tpu.memory_space<vmem>>, vector<1x38x16xbf16>
    %82 = vector.shape_cast %81 : vector<1x38x16xbf16> to vector<38x16xbf16>
    %cst_47 = arith.constant dense<0.000000e+00> : vector<38x32xf32>
    %83 = tpu.matmul %82, %50, %cst_47 {dimension_numbers = #tpu.dot_dimension_numbers<[1], [0], [0], [1], [0, 0, 1, 1], [], []>} : vector<38x16xbf16>, vector<16x32xbf16>, vector<38x32xf32> -> vector<38x32xf32>
    %84 = arith.truncf %83 : vector<38x32xf32> to vector<38x32xbf16>
    %c2_48 = arith.constant 2 : index
    %c0_49 = arith.constant 0 : index
    %c0_50 = arith.constant 0 : index
    %85 = vector.load %arg5[%c2_48, %c0_49, %c0_50] : memref<3x32x64xbf16, #tpu.memory_space<vmem>>, vector<1x32x64xbf16>
    %86 = vector.shape_cast %85 : vector<1x32x64xbf16> to vector<32x64xbf16>
    %cst_51 = arith.constant dense<0.000000e+00> : vector<38x64xf32>
    %87 = tpu.matmul %84, %86, %cst_51 {dimension_numbers = #tpu.dot_dimension_numbers<[1], [0], [0], [1], [0, 0, 1, 1], [], []>} : vector<38x32xbf16>, vector<32x64xbf16>, vector<38x64xf32> -> vector<38x64xf32>
    %88 = arith.addf %80, %87 : vector<38x64xf32>
    %c0_52 = arith.constant 0 : index
    %c0_53 = arith.constant 0 : index
    %89 = vector.load %arg6[%c0_52, %c0_53] : memref<6x64xf32, #tpu.memory_space<vmem>>, vector<1x64xf32>
    %c1_54 = arith.constant 1 : index
    %c0_55 = arith.constant 0 : index
    %90 = vector.load %arg6[%c1_54, %c0_55] : memref<6x64xf32, #tpu.memory_space<vmem>>, vector<1x64xf32>
    %c2_56 = arith.constant 2 : index
    %c0_57 = arith.constant 0 : index
    %91 = vector.load %arg6[%c2_56, %c0_57] : memref<6x64xf32, #tpu.memory_space<vmem>>, vector<4x64xf32>
    %92 = vector.broadcast %25 : vector<38x1xf32> to vector<38x64xf32>
    %93 = arith.mulf %88, %92 : vector<38x64xf32>
    %cst_58 = arith.constant dense<0.000000e+00> : vector<64xf32>
    %94 = vector.multi_reduction <add>, %93, %cst_58 [0] : vector<38x64xf32> to vector<64xf32>
    %95 = vector.shape_cast %94 : vector<64xf32> to vector<1x64xf32>
    %96 = arith.mulf %93, %88 : vector<38x64xf32>
    %cst_59 = arith.constant dense<0.000000e+00> : vector<64xf32>
    %97 = vector.multi_reduction <add>, %96, %cst_59 [0] : vector<38x64xf32> to vector<64xf32>
    %98 = vector.shape_cast %97 : vector<64xf32> to vector<1x64xf32>
    %99 = tpu.concatenate %95, %98 in 0 : vector<1x64xf32>, vector<1x64xf32> -> vector<2x64xf32>
    %cst_60 = arith.constant dense<0.000000e+00> : vector<2x4xf32>
    %100 = tpu.matmul %99, %91, %cst_60 {dimension_numbers = #tpu.dot_dimension_numbers<[1], [1], [0], [0], [0, 0, 1, 0], [], []>} : vector<2x64xf32>, vector<4x64xf32>, vector<2x4xf32> -> vector<2x4xf32>
    %101 = vector.extract_strided_slice %100 {offsets = [0, 0], sizes = [1, 4], strides = [1, 1]} : vector<2x4xf32> to vector<1x4xf32>
    %cst_61 = arith.constant 0.001953125 : f32
    %102 = vector.broadcast %cst_61 : f32 to vector<1x4xf32>
    %103 = arith.mulf %101, %102 : vector<1x4xf32>
    %104 = vector.extract_strided_slice %100 {offsets = [1, 0], sizes = [1, 4], strides = [1, 1]} : vector<2x4xf32> to vector<1x4xf32>
    %cst_62 = arith.constant 0.001953125 : f32
    %105 = vector.broadcast %cst_62 : f32 to vector<1x4xf32>
    %106 = arith.mulf %104, %105 : vector<1x4xf32>
    %107 = arith.mulf %103, %103 : vector<1x4xf32>
    %108 = arith.subf %106, %107 : vector<1x4xf32>
    %cst_63 = arith.constant 0.000000e+00 : f32
    %109 = vector.broadcast %cst_63 : f32 to vector<1x4xf32>
    %110 = arith.maximumf %108, %109 : vector<1x4xf32>
    %111 = tpu.concatenate %103, %110 in 0 : vector<1x4xf32>, vector<1x4xf32> -> vector<2x4xf32>
    %cst_64 = arith.constant dense<0.000000e+00> : vector<2x64xf32>
    %112 = tpu.matmul %111, %91, %cst_64 {dimension_numbers = #tpu.dot_dimension_numbers<[1], [0], [0], [1], [0, 0, 1, 1], [], []>} : vector<2x4xf32>, vector<4x64xf32>, vector<2x64xf32> -> vector<2x64xf32>
    %113 = vector.extract_strided_slice %112 {offsets = [0, 0], sizes = [1, 64], strides = [1, 1]} : vector<2x64xf32> to vector<1x64xf32>
    %114 = vector.broadcast %113 : vector<1x64xf32> to vector<38x64xf32>
    %115 = arith.subf %88, %114 : vector<38x64xf32>
    %116 = vector.extract_strided_slice %112 {offsets = [1, 0], sizes = [1, 64], strides = [1, 1]} : vector<2x64xf32> to vector<1x64xf32>
    %cst_65 = arith.constant 9.99999974E-6 : f32
    %117 = vector.broadcast %cst_65 : f32 to vector<1x64xf32>
    %118 = arith.addf %116, %117 : vector<1x64xf32>
    %119 = math.rsqrt %118 : vector<1x64xf32>
    %120 = arith.mulf %89, %119 : vector<1x64xf32>
    %121 = vector.broadcast %120 : vector<1x64xf32> to vector<38x64xf32>
    %122 = arith.mulf %115, %121 : vector<38x64xf32>
    %123 = vector.broadcast %90 : vector<1x64xf32> to vector<38x64xf32>
    %124 = arith.addf %122, %123 : vector<38x64xf32>
    %cst_66 = arith.constant 0.000000e+00 : f32
    %125 = vector.broadcast %cst_66 : f32 to vector<38x64xf32>
    %126 = arith.maximumf %124, %125 : vector<38x64xf32>
    %127 = vector.broadcast %25 : vector<38x1xf32> to vector<38x64xf32>
    %128 = arith.mulf %126, %127 : vector<38x64xf32>
    %129 = arith.truncf %128 : vector<38x64xf32> to vector<38x64xbf16>
    %c0_67 = arith.constant 0 : index
    %c0_68 = arith.constant 0 : index
    %130 = vector.load %arg10[%c0_67, %c0_68] : memref<38x64xbf16, #tpu.memory_space<vmem>>, vector<38x64xbf16>
    tpu.vector_store %arg10[%c0_67, %c0_68], %129 {strides = array<i32>} : memref<38x64xbf16, #tpu.memory_space<vmem>>, vector<38x64xbf16>,
    %c0_69 = arith.constant 0 : index
    %c0_70 = arith.constant 0 : index
    %131 = vector.load %arg10[%c0_69, %c0_70] : memref<38x64xbf16, #tpu.memory_space<vmem>>, vector<36x64xbf16>
    %c0_71 = arith.constant 0 : index
    %c0_72 = arith.constant 0 : index
    %c0_73 = arith.constant 0 : index
    %132 = vector.load %arg7[%c0_71, %c0_72, %c0_73] : memref<3x64x128xbf16, #tpu.memory_space<vmem>>, vector<1x64x128xbf16>
    %133 = vector.shape_cast %132 : vector<1x64x128xbf16> to vector<64x128xbf16>
    %cst_74 = arith.constant dense<0.000000e+00> : vector<36x128xf32>
    %134 = tpu.matmul %131, %133, %cst_74 {dimension_numbers = #tpu.dot_dimension_numbers<[1], [0], [0], [1], [0, 0, 1, 1], [], []>} : vector<36x64xbf16>, vector<64x128xbf16>, vector<36x128xf32> -> vector<36x128xf32>
    %c1_75 = arith.constant 1 : index
    %c0_76 = arith.constant 0 : index
    %135 = vector.load %arg10[%c1_75, %c0_76] : memref<38x64xbf16, #tpu.memory_space<vmem>>, vector<36x64xbf16>
    %c1_77 = arith.constant 1 : index
    %c0_78 = arith.constant 0 : index
    %c0_79 = arith.constant 0 : index
    %136 = vector.load %arg7[%c1_77, %c0_78, %c0_79] : memref<3x64x128xbf16, #tpu.memory_space<vmem>>, vector<1x64x128xbf16>
    %137 = vector.shape_cast %136 : vector<1x64x128xbf16> to vector<64x128xbf16>
    %cst_80 = arith.constant dense<0.000000e+00> : vector<36x128xf32>
    %138 = tpu.matmul %135, %137, %cst_80 {dimension_numbers = #tpu.dot_dimension_numbers<[1], [0], [0], [1], [0, 0, 1, 1], [], []>} : vector<36x64xbf16>, vector<64x128xbf16>, vector<36x128xf32> -> vector<36x128xf32>
    %139 = arith.addf %134, %138 : vector<36x128xf32>
    %c2_81 = arith.constant 2 : index
    %c0_82 = arith.constant 0 : index
    %140 = vector.load %arg10[%c2_81, %c0_82] : memref<38x64xbf16, #tpu.memory_space<vmem>>, vector<36x64xbf16>
    %c2_83 = arith.constant 2 : index
    %c0_84 = arith.constant 0 : index
    %c0_85 = arith.constant 0 : index
    %141 = vector.load %arg7[%c2_83, %c0_84, %c0_85] : memref<3x64x128xbf16, #tpu.memory_space<vmem>>, vector<1x64x128xbf16>
    %142 = vector.shape_cast %141 : vector<1x64x128xbf16> to vector<64x128xbf16>
    %cst_86 = arith.constant dense<0.000000e+00> : vector<36x128xf32>
    %143 = tpu.matmul %140, %142, %cst_86 {dimension_numbers = #tpu.dot_dimension_numbers<[1], [0], [0], [1], [0, 0, 1, 1], [], []>} : vector<36x64xbf16>, vector<64x128xbf16>, vector<36x128xf32> -> vector<36x128xf32>
    %144 = arith.addf %139, %143 : vector<36x128xf32>
    %c0_87 = arith.constant 0 : index
    %c0_88 = arith.constant 0 : index
    %145 = vector.load %arg8[%c0_87, %c0_88] : memref<10x128xf32, #tpu.memory_space<vmem>>, vector<1x128xf32>
    %c1_89 = arith.constant 1 : index
    %c0_90 = arith.constant 0 : index
    %146 = vector.load %arg8[%c1_89, %c0_90] : memref<10x128xf32, #tpu.memory_space<vmem>>, vector<1x128xf32>
    %c2_91 = arith.constant 2 : index
    %c0_92 = arith.constant 0 : index
    %147 = vector.load %arg8[%c2_91, %c0_92] : memref<10x128xf32, #tpu.memory_space<vmem>>, vector<8x128xf32>
    %148 = vector.broadcast %49 : vector<36x1xf32> to vector<36x128xf32>
    %149 = arith.mulf %144, %148 : vector<36x128xf32>
    %cst_93 = arith.constant dense<0.000000e+00> : vector<128xf32>
    %150 = vector.multi_reduction <add>, %149, %cst_93 [0] : vector<36x128xf32> to vector<128xf32>
    %151 = vector.shape_cast %150 : vector<128xf32> to vector<1x128xf32>
    %152 = arith.mulf %149, %144 : vector<36x128xf32>
    %cst_94 = arith.constant dense<0.000000e+00> : vector<128xf32>
    %153 = vector.multi_reduction <add>, %152, %cst_94 [0] : vector<36x128xf32> to vector<128xf32>
    %154 = vector.shape_cast %153 : vector<128xf32> to vector<1x128xf32>
    %155 = tpu.concatenate %151, %154 in 0 : vector<1x128xf32>, vector<1x128xf32> -> vector<2x128xf32>
    %cst_95 = arith.constant dense<0.000000e+00> : vector<2x8xf32>
    %156 = tpu.matmul %155, %147, %cst_95 {dimension_numbers = #tpu.dot_dimension_numbers<[1], [1], [0], [0], [0, 0, 1, 0], [], []>} : vector<2x128xf32>, vector<8x128xf32>, vector<2x8xf32> -> vector<2x8xf32>
    %157 = vector.extract_strided_slice %156 {offsets = [0, 0], sizes = [1, 8], strides = [1, 1]} : vector<2x8xf32> to vector<1x8xf32>
    %cst_96 = arith.constant 0.001953125 : f32
    %158 = vector.broadcast %cst_96 : f32 to vector<1x8xf32>
    %159 = arith.mulf %157, %158 : vector<1x8xf32>
    %160 = vector.extract_strided_slice %156 {offsets = [1, 0], sizes = [1, 8], strides = [1, 1]} : vector<2x8xf32> to vector<1x8xf32>
    %cst_97 = arith.constant 0.001953125 : f32
    %161 = vector.broadcast %cst_97 : f32 to vector<1x8xf32>
    %162 = arith.mulf %160, %161 : vector<1x8xf32>
    %163 = arith.mulf %159, %159 : vector<1x8xf32>
    %164 = arith.subf %162, %163 : vector<1x8xf32>
    %cst_98 = arith.constant 0.000000e+00 : f32
    %165 = vector.broadcast %cst_98 : f32 to vector<1x8xf32>
    %166 = arith.maximumf %164, %165 : vector<1x8xf32>
    %167 = tpu.concatenate %159, %166 in 0 : vector<1x8xf32>, vector<1x8xf32> -> vector<2x8xf32>
    %cst_99 = arith.constant dense<0.000000e+00> : vector<2x128xf32>
    %168 = tpu.matmul %167, %147, %cst_99 {dimension_numbers = #tpu.dot_dimension_numbers<[1], [0], [0], [1], [0, 0, 1, 1], [], []>} : vector<2x8xf32>, vector<8x128xf32>, vector<2x128xf32> -> vector<2x128xf32>
    %169 = vector.extract_strided_slice %168 {offsets = [0, 0], sizes = [1, 128], strides = [1, 1]} : vector<2x128xf32> to vector<1x128xf32>
    %170 = vector.broadcast %169 : vector<1x128xf32> to vector<36x128xf32>
    %171 = arith.subf %144, %170 : vector<36x128xf32>
    %172 = vector.extract_strided_slice %168 {offsets = [1, 0], sizes = [1, 128], strides = [1, 1]} : vector<2x128xf32> to vector<1x128xf32>
    %cst_100 = arith.constant 9.99999974E-6 : f32
    %173 = vector.broadcast %cst_100 : f32 to vector<1x128xf32>
    %174 = arith.addf %172, %173 : vector<1x128xf32>
    %175 = math.rsqrt %174 : vector<1x128xf32>
    %176 = arith.mulf %145, %175 : vector<1x128xf32>
    %177 = vector.broadcast %176 : vector<1x128xf32> to vector<36x128xf32>
    %178 = arith.mulf %171, %177 : vector<36x128xf32>
    %179 = vector.broadcast %146 : vector<1x128xf32> to vector<36x128xf32>
    %180 = arith.addf %178, %179 : vector<36x128xf32>
    %cst_101 = arith.constant 0.000000e+00 : f32
    %181 = vector.broadcast %cst_101 : f32 to vector<36x128xf32>
    %182 = arith.maximumf %180, %181 : vector<36x128xf32>
    %c0_102 = arith.constant 0 : index
    %c0_103 = arith.constant 0 : index
    %183 = vector.load %arg9[%c0_102, %c0_103] : memref<36x128xf32, #tpu.memory_space<vmem>>, vector<36x128xf32>
    tpu.vector_store %arg9[%c0_102, %c0_103], %182 {strides = array<i32>} : memref<36x128xf32, #tpu.memory_space<vmem>>, vector<36x128xf32>,
    return
  }
  func.func @transform_0(%arg0: i32) -> (i32, i32) {
    %c0_i32 = arith.constant 0 : i32
    %c0_i32_0 = arith.constant 0 : i32
    %c0_i32_1 = arith.constant 0 : i32
    return %c0_i32, %c0_i32_0 : i32, i32
  }
  func.func @transform_1(%arg0: i32) -> (i32, i32) {
    %c0_i32 = arith.constant 0 : i32
    %c0_i32_0 = arith.constant 0 : i32
    %c0_i32_1 = arith.constant 0 : i32
    return %c0_i32, %c0_i32_0 : i32, i32
  }
  func.func @transform_2(%arg0: i32) -> (i32, i32, i32) {
    %c0_i32 = arith.constant 0 : i32
    %c0_i32_0 = arith.constant 0 : i32
    %c0_i32_1 = arith.constant 0 : i32
    %c0_i32_2 = arith.constant 0 : i32
    return %c0_i32, %c0_i32_0, %c0_i32_1 : i32, i32, i32
  }
  func.func @transform_3(%arg0: i32) -> (i32, i32, i32) {
    %c0_i32 = arith.constant 0 : i32
    %c0_i32_0 = arith.constant 0 : i32
    %c0_i32_1 = arith.constant 0 : i32
    %c0_i32_2 = arith.constant 0 : i32
    return %c0_i32, %c0_i32_0, %c0_i32_1 : i32, i32, i32
  }
  func.func @transform_4(%arg0: i32) -> (i32, i32, i32) {
    %c0_i32 = arith.constant 0 : i32
    %c0_i32_0 = arith.constant 0 : i32
    %c0_i32_1 = arith.constant 0 : i32
    %c0_i32_2 = arith.constant 0 : i32
    return %c0_i32, %c0_i32_0, %c0_i32_1 : i32, i32, i32
  }
  func.func @transform_5(%arg0: i32) -> (i32, i32) {
    %c0_i32 = arith.constant 0 : i32
    %c0_i32_0 = arith.constant 0 : i32
    %c0_i32_1 = arith.constant 0 : i32
    return %c0_i32, %c0_i32_0 : i32, i32
  }
  func.func @transform_6(%arg0: i32) -> (i32, i32, i32) {
    %c0_i32 = arith.constant 0 : i32
    %c0_i32_0 = arith.constant 0 : i32
    %c0_i32_1 = arith.constant 0 : i32
    %c0_i32_2 = arith.constant 0 : i32
    return %c0_i32, %c0_i32_0, %c0_i32_1 : i32, i32, i32
  }
  func.func @transform_7(%arg0: i32) -> (i32, i32) {
    %c0_i32 = arith.constant 0 : i32
    %c0_i32_0 = arith.constant 0 : i32
    %c0_i32_1 = arith.constant 0 : i32
    return %c0_i32, %c0_i32_0 : i32, i32
  }
  func.func @transform_8(%arg0: i32) -> (i32, i32) {
    %c0_i32 = arith.constant 0 : i32
    %c0_i32_0 = arith.constant 0 : i32
    %c0_i32_1 = arith.constant 0 : i32
    return %c0_i32, %c0_i32_0 : i32, i32
  }
}

</mosaic_0001>

<bundles_post_ra>
// kernel: up_forward.1
= control target key start
LH: loop header
LB: loop body
LE: loop exit
PB: predicated region body
PF: predicated region fallthrough
CT: control target
= control target key end

     0   :  { %v2627_v0 = vmov 0.0   ;;  %vm3236_vm0 = vmmov 0   ;;  %vm290_vm1 = vcmask 130048   ;;  %vm375_vm2 = vcmask 261120   ;;  %s3224_s1 = inlined_call_operand.vmem [shape: bf16[16,32], index: 1, kind: input, shape index: {}]   ;;  %s3225_s2 = inlined_call_operand.vmem [shape: bf16[3,38,16], index: 2, kind: input, shape index: {}]   ;;  %s3226_s4 = inlined_call_operand.vmem [shape: bf16[3,32,64], index: 4, kind: input, shape index: {}]   ;;  %s3227_s3 = inlined_call_operand.vmem [shape: bf16[3,64,64], index: 3, kind: input, shape index: {}]   ;;  %s3228_s0 = inlined_call_operand.vmem [shape: bf16[40,64], index: 0, kind: input, shape index: {}]   ;;  %s3229_s5 = inlined_call_operand.vmem [shape: f32[6,64], index: 5, kind: input, shape index: {}]   ;;  %s3230_s6 = inlined_call_operand.vmem [shape: bf16[3,64,128], index: 6, kind: input, shape index: {}]   ;;  %s3231_s7 = inlined_call_operand.vmem [shape: f32[10,128], index: 7, kind: input, shape index: {}]   ;;  %s3232_s8 = inlined_call_operand.vmem [shape: f32[36,128], index: 8, kind: output, shape index: {}]  }
   0x1   :  { %2237 = vmatprep.subr.bf16.mxu0 %v2627_v0  ;;  %v2573_v1 = vld [vmem:[%s3224_s1] sm:$0xff]   ;;  %2239 = vmatprep.mubr.msk.bf16.mxu0 %vm3236_vm0, %v2627_v0  ;;  %v2575_v3 = vld [vmem:[%s3225_s2 + $0x8] sm:$0xff]   ;;  %v2576_v5 = vld [vmem:[%s3225_s2 + $0x10] ss:$0 sps:$4 sm:$0x77]   ;;  %vm3238_vm3 = vcmask 523264  }
   0x2   :  { %v2574_v2 = vld [vmem:[%s3225_s2] sm:$0xff]   ;;  %2251 = vmatprep.subr.bf16.mxu1 %v2627_v0  ;;  %2255 = vmatprep.mubr.msk.bf16.mxu1 %vm3236_vm0, %v2627_v0  ;;  %v2577_v6 = vld [vmem:[%s3225_s2 + $0x14] sm:$0xff]   ;;  %v2580_v9 = vld [vmem:[%s3225_s2 + $0x28] sm:$0xff]   ;;  %vm3235_vm4 = vsmask.f32 7424  ;;  %vm3234_vm5 = vcmask 1046528  }
   0x3   :  { %2238 = vmatpush3.bf16.msra.mxu0 %v2573_v1  ;;  %v2583_v4 = vld [vmem:[%s3226_s4] sm:$0xff]   ;;  %v2581_v10 = vld [vmem:[%s3225_s2 + $0x30] sm:$0xff]   ;;  %v2582_v11 = vld [vmem:[%s3225_s2 + $0x38] ss:$0 sps:$4 sm:$0x77]   ;;  %vm3233_vm6 = vcmask 1043456  }
   0x4   :  { %2307 = vmatprep.subr.bf16.mxu0 %v2627_v0  ;;  %2252 = vmatpush3.bf16.msra.mxu1 %v2583_v4  ;;  %v2578_v7 = vld [vmem:[%s3225_s2 + $0x1c] sm:$0xff]   ;;  %v2579_v8 = vld [vmem:[%s3225_s2 + $0x24] ss:$0 sps:$4 sm:$0x77]   ;;  %v2584_v12 = vld [vmem:[%s3226_s4 + $0x8] sm:$0xff]  }
   0x5   :  { %2253 = vmatprep.subr.bf16.mxu1 %v2627_v0  ;;  %v2585_v16 = vld [vmem:[%s3227_s3] sm:$0xff]   ;;  %v2586_v19 = vld [vmem:[%s3227_s3 + $0x8] sm:$0xff]   ;;  %v2587_v23 = vld [vmem:[%s3227_s3 + $0x10] sm:$0xff]  }
   0x6   :  { %2240 = vmatmul.mubr.msk.bf16.vlgmr.msra.gmra.mrb[0].mxu0 %vm290_vm1, %v2574_v2  ;;  %v2588_v26 = vld [vmem:[%s3227_s3 + $0x18] sm:$0xff]   ;;  %v253_v32 = vld [vmem:[%s3228_s0] sm:$0xf]  ;;  %v2779_v33 = vld [vmem:[%s3228_s0 + $0x4] sm:$0xf] }
   0x7   :  { %2243 = vmatprep.mubr.msk.bf16.mxu0 %vm3236_vm0, %v2627_v0  ;;  %2308 = vmatpush3.bf16.msra.mxu0 %v2573_v1  ;;  %v2019_v35 = vcombine.low %v253_v32, %v2779_v33  ;;  %v2590_v37 = vld [vmem:[%s3227_s3 + $0x20] sm:$0xff]   ;;  %v2591_v41 = vld [vmem:[%s3227_s3 + $0x28] sm:$0xff]   ;;  %v2593_v45 = vld [vmem:[%s3227_s3 + $0x30] sm:$0xff]  }
   0x8   :  { %2357 = vmatprep.subr.bf16.mxu0 %v2627_v0  ;;  %2254 = vmatpush3.bf16.msra.mxu1 %v2584_v12  ;;  %v2803_v43 = vld [vmem:[%s3228_s0 + $0x8] sm:$0xff]   ;;  %v2595_v49 = vld [vmem:[%s3227_s3 + $0x38] sm:$0xff]   ;;  %v2594_v52 = vld [vmem:[%s3228_s0 + $0x10] ss:$0 sps:$4 sm:$0x77]  }
   0x9   :  { %2267 = vmatprep.subr.bf16.mxu1 %v2627_v0  ;;  %v560_v50 = vshll.u32 %v2019_v35, 16  ;;  %v558_v54 = vshrl.u32 %v2019_v35, 16  ;;  %v564_v56 = vshll.u32 %v2803_v43, 16  ;;  %v2834_v61 = vld [vmem:[%s3228_s0 + $0x10] ss:$0 sps:$4 sm:$0xff]  }
   0xa   :  { %v2596_v2 = vld [vmem:[%s3226_s4 + $0x10] sm:$0xff]   ;;  %v572_v4 = vshll.u32 %v2834_v61, 16 }
   0xb   :  { %v562_v55 = vrot.slane %v560_v50, 1  ;;  %v566_v60 = vrot.slane %v564_v56, 1 }
   0xd   :  { %v563_v59 = vor.u32 %v562_v55, %v558_v54 }
   0xe   :  { %2244 = vmatmul.mubr.msk.bf16.gmra.mrb[4].mxu0 %vm290_vm1, %v2575_v3  ;;  %v568_v3 = vshrl.u32 %v2803_v43, 16 }
   0xf   :  { %2247 = vmatprep.mubr.msk.bf16.mxu0 %vm3236_vm0, %v2627_v0 }
  0x16   :  { %2248 = vmatmul.mubr.msk.bf16.gmra.mrb[8].mxu0 %vm290_vm1, %v2576_v5 }
  0x17   :  { %2309 = vmatprep.mubr.msk.bf16.mxu0 %vm3236_vm0, %v2627_v0 }
  0x1e   :  { %2310 = vmatmul.mubr.msk.bf16.vlgmr.msra.gmra.mrb[12].mxu0 %vm290_vm1, %v2577_v6 }
  0x1f   :  { %2313 = vmatprep.mubr.msk.bf16.mxu0 %vm3236_vm0, %v2627_v0  ;;  %2358 = vmatpush3.bf16.msra.mxu0 %v2573_v1  ;;  %v567_v1 = vsel %vm3235_vm4, %v563_v59, %v566_v60 }
  0x20   :  { %2392 = vmatprep.subr.mxu0 %v2627_v0 }
  0x26   :  { %2314 = vmatmul.mubr.msk.bf16.gmra.mrb[16].mxu0 %vm290_vm1, %v2578_v7 }
  0x27   :  { %2317 = vmatprep.mubr.msk.bf16.mxu0 %vm3236_vm0, %v2627_v0 }
  0x2e   :  { %2318 = vmatmul.mubr.msk.bf16.gmra.mrb[20].mxu0 %vm290_vm1, %v2579_v8  ;;  %v570_v8 = vor.u32 %v568_v3, %v566_v60 }
  0x2f   :  { %2359 = vmatprep.mubr.msk.bf16.mxu0 %vm3236_vm0, %v2627_v0 }
  0x36   :  { %2360 = vmatmul.mubr.msk.bf16.vlgmr.msra.gmra.mrb[24].mxu0 %vm290_vm1, %v2580_v9  ;;  %v574_v9 = vrot.slane %v572_v4, 1 }
  0x37   :  { %2363 = vmatprep.mubr.msk.bf16.mxu0 %vm3236_vm0, %v2627_v0 }
  0x3e   :  { %2364 = vmatmul.mubr.msk.bf16.gmra.mrb[28].mxu0 %vm290_vm1, %v2581_v10  ;;  %v2598_v10 = vld [vmem:[%s3226_s4 + $0x18] sm:$0xff]  }
  0x3f   :  { %2367 = vmatprep.mubr.msk.bf16.mxu0 %vm3236_vm0, %v2627_v0 }
  0x46   :  { %2368 = vmatmul.mubr.msk.bf16.gmra.mrb[32].mxu0 %vm290_vm1, %v2582_v11 }
  0x47   :  { %2394 = vmatprep.mubr.msk.f32.mxu0 %vm3236_vm0, %v2627_v0 }
  0xd9   :  { %v334_v13 = vpop.f32.mrb[0].mxu0 }
  0xda   :  { %v2241_v14 = vpop.f32.mrb[1].mxu0 }
  0xdb   :  { %v337_v15 = vpop.f32.mrb[2].mxu0 }
  0xdc   :  { %v356_v17 = vpack.c.bf16 %v337_v15, %v334_v13  ;;  %v2242_v18 = vpop.f32.mrb[3].mxu0  ;;  %v575_v13 = vsel %vm3235_vm4, %v570_v8, %v574_v9 }
  0xde   :  { %2256 = vmatmul.mubr.msk.bf16.vlgmr.msra.gmra.mrb[0].mxu1 %vm375_vm2, %v356_v17  ;;  %v576_v17 = vshrl.u32 %v2834_v61, 16 }
  0xdf   :  { %2268 = vmatpush3.bf16.msra.mxu1 %v2585_v16  ;;  %2259 = vmatprep.mubr.msk.bf16.mxu1 %vm3236_vm0, %v2627_v0 }
  0xe0   :  { %2269 = vmatprep.subr.bf16.mxu1 %v2627_v0 }
  0xe1   :  { %v342_v20 = vpop.f32.mrb[4].mxu0 }
  0xe2   :  { %v2245_v21 = vpop.f32.mrb[5].mxu0 }
  0xe3   :  { %v345_v22 = vpop.f32.mrb[6].mxu0  ;;  %2270 = vmatpush3.bf16.msra.mxu1 %v2586_v19  ;;  %v578_v19 = vor.u32 %v576_v17, %v574_v9 }
  0xe4   :  { %v357_v24 = vpack.c.bf16 %v345_v22, %v342_v20  ;;  %v2246_v25 = vpop.f32.mrb[7].mxu0  ;;  %2271 = vmatprep.subr.bf16.mxu1 %v2627_v0 }
  0xe5   :  { %v2601_v25 = vld [vmem:[%s3227_s3 + $0x50] sm:$0xff]  }
  0xe6   :  { %2260 = vmatmul.mubr.msk.bf16.gmra.mrb[4].mxu1 %vm375_vm2, %v357_v24  ;;  %v2600_v24 = vld [vmem:[%s3227_s3 + $0x48] sm:$0xff]  }
  0xe7   :  { %2272 = vmatpush3.bf16.msra.mxu1 %v2587_v23  ;;  %2263 = vmatprep.mubr.msk.bf16.mxu1 %vm3236_vm0, %v2627_v0  ;;  %v2599_v23 = vld [vmem:[%s3227_s3 + $0x40] sm:$0xff]  }
  0xe8   :  { %2273 = vmatprep.subr.bf16.mxu1 %v2627_v0 }
  0xe9   :  { %v350_v27 = vpop.f32.mrb[8].mxu0 }
  0xea   :  { %v358_v28 = vpack.c.bf16 %v350_v27, %v350_v27  ;;  %v2249_v29 = vpop.f32.mrb[9].mxu0  ;;  %v847_v27 = vld [vmem:[%s3228_s0] sm:$0xe] }
  0xeb   :  { %v353_v30 = vpop.f32.mrb[10].mxu0  ;;  %2274 = vmatpush3.bf16.msra.mxu1 %v2588_v26  ;;  %v2602_v26 = vld [vmem:[%s3227_s3 + $0x58] sm:$0xff]   ;;  %v2073_v29 = vcombine.low %v847_v27, %v2779_v33  ;;  %v864_v33 = vrot.slane %v2834_v61, 1 }
  0xec   :  { %v2250_v31 = vpop.f32.mrb[11].mxu0  ;;  %2287 = vmatprep.subr.bf16.mxu1 %v2627_v0 }
  0xed   :  { %v861_v30 = vrot.slane %v2073_v29, 1  ;;  %v862_v31 = vrot.slane %v2803_v43, 1 }
  0xee   :  { %2264 = vmatmul.mubr.msk.bf16.gmra.mrb[8].mxu1 %vm375_vm2, %v358_v28 }
  0xef   :  { %2275 = vmatprep.mubr.msk.bf16.mxu1 %vm3236_vm0, %v2627_v0  ;;  %v863_v32 = vsel %vm3234_vm5, %v861_v30, %v862_v31 }
  0xf1   :  { %v2781_v34 = vpop.f32.mrb[12].mxu0 }
  0xf2   :  { %v2311_v36 = vpop.f32.mrb[13].mxu0 }
  0xf3   :  { %v2787_v38 = vpop.f32.mrb[14].mxu0  ;;  %v865_v36 = vsel %vm3234_vm5, %v862_v31, %v864_v33 }
  0xf4   :  { %v757_v39 = vpack.c.bf16 %v2787_v38, %v2781_v34  ;;  %v2312_v40 = vpop.f32.mrb[15].mxu0  ;;  %v2604_v34 = vld [vmem:[%s3226_s4 + $0x20] sm:$0xff]  }
  0xf5   :  { %v1136_v38 = vld [vmem:[%s3229_s5 + $0x2] sm:$0xf] }
  0xf6   :  { %2276 = vmatmul.mubr.msk.bf16.vlgmr.msra.gmra.mrb[0].mxu1 %vm3238_vm3, %v2019_v35  ;;  %v2605_v35 = vld [vmem:[%s3226_s4 + $0x28] sm:$0xff]   ;;  %2393 = vmatpush3.msk.msra.mxu0 %vm3233_vm6, %v1136_v38 }
  0xf7   :  { %2288 = vmatpush3.bf16.msra.mxu1 %v2590_v37  ;;  %2279 = vmatprep.mubr.msk.bf16.mxu1 %vm3236_vm0, %v2627_v0 }
  0xf8   :  { %2289 = vmatprep.subr.bf16.mxu1 %v2627_v0  ;;  %2397 = vmatprep.subr.bf16.mxu0 %v2627_v0 }
  0xf9   :  { %v2798_v42 = vpop.f32.mrb[16].mxu0 }
  0xfa   :  { %v2315_v44 = vpop.f32.mrb[17].mxu0 }
  0xfb   :  { %2290 = vmatpush3.bf16.msra.mxu1 %v2591_v41  ;;  %v2808_v46 = vpop.f32.mrb[18].mxu0 }
  0xfc   :  { %2291 = vmatprep.subr.bf16.mxu1 %v2627_v0  ;;  %v758_v47 = vpack.c.bf16 %v2808_v46, %v2798_v42  ;;  %v2316_v48 = vpop.f32.mrb[19].mxu0 }
  0xfe   :  { %2280 = vmatmul.mubr.msk.bf16.gmra.mrb[4].mxu1 %vm3238_vm3, %v2803_v43 }
  0xff   :  { %2292 = vmatpush3.bf16.msra.mxu1 %v2593_v45  ;;  %2283 = vmatprep.mubr.msk.bf16.mxu1 %vm3236_vm0, %v2627_v0 }
 0x100   :  { %2293 = vmatprep.subr.bf16.mxu1 %v2627_v0 }
 0x101   :  { %v2821_v51 = vpop.f32.mrb[20].mxu0 }
 0x102   :  { %v2319_v53 = vpop.f32.mrb[21].mxu0  ;;  %v759_v28 = vpack.c.bf16 %v2821_v51, %v2821_v51 }
 0x103   :  { %2294 = vmatpush3.bf16.msra.mxu1 %v2595_v49  ;;  %v754_v57 = vpop.f32.mrb[22].mxu0 }
 0x104   :  { %2321 = vmatprep.subr.bf16.mxu1 %v2627_v0  ;;  %v2320_v58 = vpop.f32.mrb[23].mxu0 }
 0x106   :  { %2284 = vmatmul.mubr.msk.bf16.gmra.mrb[8].mxu1 %vm3238_vm3, %v2594_v52 }
 0x107   :  { %2295 = vmatprep.mubr.msk.bf16.mxu1 %vm3236_vm0, %v2627_v0 }
 0x109   :  { %v2836_v62 = vpop.f32.mrb[24].mxu0 }
 0x10a   :  { %v2361_v63 = vpop.f32.mrb[25].mxu0 }
 0x10b   :  { %v2844_v5 = vpop.f32.mrb[26].mxu0 }
 0x10c   :  { %v1044_v6 = vpack.c.bf16 %v2844_v5, %v2836_v62  ;;  %v2362_v7 = vpop.f32.mrb[27].mxu0 }
 0x10e   :  { %2296 = vmatmul.mubr.msk.bf16.vlgmr.msra.gmra.mrb[0].mxu1 %vm3238_vm3, %v567_v1 }
 0x10f   :  { %2322 = vmatpush3.bf16.msra.mxu1 %v2596_v2  ;;  %2299 = vmatprep.mubr.msk.bf16.mxu1 %vm3236_vm0, %v2627_v0 }
 0x110   :  { %2323 = vmatprep.subr.bf16.mxu1 %v2627_v0 }
 0x111   :  { %v1030_v11 = vpop.f32.mrb[28].mxu0 }
 0x112   :  { %v2365_v12 = vpop.f32.mrb[29].mxu0 }
 0x113   :  { %2324 = vmatpush3.bf16.msra.mxu1 %v2598_v10  ;;  %v1033_v14 = vpop.f32.mrb[30].mxu0 }
 0x114   :  { %2337 = vmatprep.subr.bf16.mxu1 %v2627_v0  ;;  %v1045_v15 = vpack.c.bf16 %v1033_v14, %v1030_v11  ;;  %v2366_v16 = vpop.f32.mrb[31].mxu0 }
 0x116   :  { %2300 = vmatmul.mubr.msk.bf16.gmra.mrb[4].mxu1 %vm3238_vm3, %v575_v13 }
 0x117   :  { %2303 = vmatprep.mubr.msk.bf16.mxu1 %vm3236_vm0, %v2627_v0 }
 0x119   :  { %v1038_v18 = vpop.f32.mrb[32].mxu0 }
 0x11a   :  { %v2369_v20 = vpop.f32.mrb[33].mxu0  ;;  %v1046_v37 = vpack.c.bf16 %v1038_v18, %v1038_v18 }
 0x11b   :  { %v1041_v21 = vpop.f32.mrb[34].mxu0 }
 0x11c   :  { %v2370_v22 = vpop.f32.mrb[35].mxu0 }
 0x11e   :  { %2304 = vmatmul.mubr.msk.bf16.gmra.mrb[8].mxu1 %vm3238_vm3, %v578_v19 }
 0x11f   :  { %2325 = vmatprep.mubr.msk.bf16.mxu1 %vm3236_vm0, %v2627_v0 }
 0x126   :  { %2326 = vmatmul.mubr.msk.bf16.vlgmr.msra.gmra.mrb[0].mxu1 %vm375_vm2, %v757_v39  ;;  %v30_v39 = vlaneseq }
 0x127   :  { %2338 = vmatpush3.bf16.msra.mxu1 %v2599_v23  ;;  %2329 = vmatprep.mubr.msk.bf16.mxu1 %vm3236_vm0, %v2627_v0 }
 0x128   :  { %2339 = vmatprep.subr.bf16.mxu1 %v2627_v0  ;;  %v2941_v40 = vshrl.u32 %v30_v39, 7 }
 0x12a   :  { %v2944_v41 = vadd.s32 8, %v2941_v40  ;;  %v36_v42 = vadd.s32 17, %v2941_v40  ;;  %v2952_v46 = vadd.s32 16, %v2941_v40  ;;  %v2958_v49 = vadd.s32 24, %v2941_v40 }
 0x12b   :  { %2340 = vmatpush3.bf16.msra.mxu1 %v2600_v24  ;;  %v2967_v55 = vadd.s32 32, %v2941_v40 }
 0x12c   :  { %2341 = vmatprep.subr.bf16.mxu1 %v2627_v0  ;;  %v37_v43 = vadd.s32 17, %v2944_v41  ;;  %v2948_v44 = vmul.u32.u64.low 3817748708, %v36_v42  ;;  %v2949_v45 = vmul.u32.u64.high 3817748708, %v36_v42, %v2948_v44  ;;  %v38_v50 = vadd.s32 17, %v2952_v46 }
 0x12d   :  { %v39_v51 = vadd.s32 17, %v2958_v49  ;;  %v40_v60 = vadd.s32 17, %v2967_v55 }
 0x12e   :  { %2330 = vmatmul.mubr.msk.bf16.gmra.mrb[4].mxu1 %vm375_vm2, %v758_v47  ;;  %v2954_v47 = vmul.u32.u64.low 3817748708, %v37_v43  ;;  %v2955_v48 = vmul.u32.u64.high 3817748708, %v37_v43, %v2954_v47  ;;  %v47_v52 = vshrl.u32 %v2949_v45, 4 }
 0x12f   :  { %2342 = vmatpush3.bf16.msra.mxu1 %v2601_v25  ;;  %2333 = vmatprep.mubr.msk.bf16.mxu1 %vm3236_vm0, %v2627_v0  ;;  %v2963_v53 = vmul.u32.u64.low 3817748708, %v38_v50  ;;  %v2964_v54 = vmul.u32.u64.high 3817748708, %v38_v50, %v2963_v53  ;;  %v2970_v57 = vmul.u32.u64.low 3817748708, %v39_v51  ;;  %v2971_v58 = vmul.u32.u64.high 3817748708, %v39_v51, %v2970_v57 }
 0x130   :  { %2343 = vmatprep.subr.bf16.mxu1 %v2627_v0  ;;  %v58_v56 = vshrl.u32 %v2955_v48, 4  ;;  %v48_v59 = vmul.u32 18, %v47_v52  ;;  %v2975_v1 = vmul.u32.u64.low 3817748708, %v40_v60  ;;  %v2976_v2 = vmul.u32.u64.high 3817748708, %v40_v60, %v2975_v1 }
 0x131   :  { %v69_v63 = vshrl.u32 %v2964_v54, 4  ;;  %v80_v4 = vshrl.u32 %v2971_v58, 4 }
 0x132   :  { %v59_v61 = vmul.u32 18, %v58_v56  ;;  %v49_v62 = vsub.s32 %v36_v42, %v48_v59  ;;  %v91_v10 = vshrl.u32 %v2976_v2, 4 }
 0x133   :  { %2344 = vmatpush3.bf16.msra.mxu1 %v2602_v26  ;;  %v70_v5 = vmul.u32 18, %v69_v63  ;;  %v81_v7 = vmul.u32 18, %v80_v4 }
 0x134   :  { %2371 = vmatprep.subr.bf16.mxu1 %v2627_v0  ;;  %v60_v3 = vsub.s32 %v37_v43, %v59_v61  ;;  %vm96_vm7 = vcmp.ne.s32.totalorder %v49_v62, 0  ;;  %vm101_vm8 = vcmp.lt.s32.totalorder %v49_v62, 0  ;;  %v92_v14 = vmul.u32 18, %v91_v10 }
 0x135   :  { %vm106_vm11 = vmand %vm101_vm8, %vm96_vm7  ;;  %v71_v9 = vsub.s32 %v38_v50, %v70_v5  ;;  %v82_v12 = vsub.s32 %v39_v51, %v81_v7 }
 0x136   :  { %2334 = vmatmul.mubr.msk.bf16.gmra.mrb[8].mxu1 %vm375_vm2, %v759_v28  ;;  %vm97_vm9 = vcmp.ne.s32.totalorder %v60_v3, 0  ;;  %vm102_vm10 = vcmp.lt.s32.totalorder %v60_v3, 0  ;;  %v112_v8 = vadd.s32 18, %v60_v3  ;;  %v93_v17 = vsub.s32 %v40_v60, %v92_v14 }
 0x137   :  { %2345 = vmatprep.mubr.msk.bf16.mxu1 %vm3236_vm0, %v2627_v0  ;;  %vm107_vm12 = vmand %vm102_vm10, %vm97_vm9  ;;  %vm98_vm13 = vcmp.ne.s32.totalorder %v71_v9, 0  ;;  %vm103_vm14 = vcmp.lt.s32.totalorder %v71_v9, 0  ;;  %vm104_vm6 = vcmp.lt.s32.totalorder %v82_v12, 0  ;;  %v114_v16 = vadd.s32 18, %v82_v12 }
 0x138   :  { %v117_v13 = vsel %vm107_vm12, %v112_v8, %v60_v3  ;;  %vm100_vm9 = vcmp.ne.s32.totalorder %v93_v17, 0  ;;  %vm105_vm10 = vcmp.lt.s32.totalorder %v93_v17, 0  ;;  %v115_v25 = vadd.s32 18, %v93_v17 }
 0x139   :  { %vm122_vm5 = vcmp.ge.s32.totalorder %v117_v13, 1  ;;  %vm127_vm4 = vcmp.le.s32.totalorder %v117_v13, 16 }
 0x13e   :  { %2346 = vmatmul.mubr.msk.bf16.vlgmr.msra.gmra.mrb[0].mxu1 %vm3238_vm3, %v863_v32 }
 0x13f   :  { %2372 = vmatpush3.bf16.msra.mxu1 %v2604_v34  ;;  %2349 = vmatprep.mubr.msk.bf16.mxu1 %vm3236_vm0, %v2627_v0 }
 0x140   :  { %2373 = vmatprep.subr.bf16.mxu1 %v2627_v0 }
 0x143   :  { %2374 = vmatpush3.bf16.msra.mxu1 %v2605_v35 }
 0x144   :  { %2387 = vmatprep.subr.mxu1 %v2627_v0 }
 0x146   :  { %2350 = vmatmul.mubr.msk.bf16.gmra.mrb[4].mxu1 %vm3238_vm3, %v865_v36 }
 0x147   :  { %2353 = vmatprep.mubr.msk.bf16.mxu1 %vm3236_vm0, %v2627_v0 }
 0x14e   :  { %2354 = vmatmul.mubr.msk.bf16.gmra.mrb[8].mxu1 %vm3238_vm3, %v864_v33 }
 0x14f   :  { %2375 = vmatprep.mubr.msk.bf16.mxu1 %vm3236_vm0, %v2627_v0 }
 0x156   :  { %2376 = vmatmul.mubr.msk.bf16.vlgmr.msra.gmra.mrb[0].mxu1 %vm375_vm2, %v1044_v6  ;;  %v111_v6 = vadd.s32 18, %v49_v62 }
 0x157   :  { %2379 = vmatprep.mubr.msk.bf16.mxu1 %vm3236_vm0, %v2627_v0  ;;  %2388 = vmatpush3.xpose.msk.msra.mxu1 %vm3238_vm3, %v1136_v38  ;;  %vm132_vm3 = vmand %vm122_vm5, %vm127_vm4 }
 0x158   :  { %2457 = vmatprep.subr.mxu1 %v2627_v0  ;;  %v116_v11 = vsel %vm106_vm11, %v111_v6, %v49_v62  ;;  %v2986_v22 = vsel %vm132_vm3, 1.0, %v2627_v0  ;;  %vm110_vm5 = vmand %vm105_vm10, %vm100_vm9 }
 0x159   :  { %vm121_vm15 = vcmp.ge.s32.totalorder %v116_v11, 1  ;;  %vm126_vm1 = vcmp.le.s32.totalorder %v116_v11, 16  ;;  %v120_v34 = vsel %vm110_vm5, %v115_v25, %v93_v17 }
 0x15a   :  { %vm131_vm7 = vmand %vm121_vm15, %vm126_vm1 }
 0x15b   :  { %v2981_v19 = vsel %vm131_vm7, 1.0, %v2627_v0  ;;  %vm130_vm7 = vcmp.le.s32.totalorder %v120_v34, 16 }
 0x15e   :  { %2380 = vmatmul.mubr.msk.bf16.gmra.mrb[4].mxu1 %vm375_vm2, %v1045_v15  ;;  %v113_v15 = vadd.s32 18, %v71_v9 }
 0x15f   :  { %2383 = vmatprep.mubr.msk.bf16.mxu1 %vm3236_vm0, %v2627_v0 }
 0x166   :  { %2384 = vmatmul.mubr.msk.bf16.gmra.mrb[8].mxu1 %vm375_vm2, %v1046_v37  ;;  %vm99_vm2 = vcmp.ne.s32.totalorder %v82_v12, 0 }
 0x167   :  { %2389 = vmatprep.mubr.msk.f32.mxu1 %vm3236_vm0, %v2627_v0  ;;  %vm108_vm0 = vmand %vm103_vm14, %vm98_vm13 }
 0x168   :  { %vm109_vm8 = vmand %vm104_vm6, %vm99_vm2  ;;  %v118_v18 = vsel %vm108_vm0, %v113_v15, %v71_v9  ;;  %vm3241_vm6 = vcmask 523264   ;;  %vm125_vm2 = vcmp.ge.s32.totalorder %v120_v34, 1 }
 0x169   :  { %v119_v20 = vsel %vm109_vm8, %v114_v16, %v82_v12  ;;  %vm123_vm11 = vcmp.ge.s32.totalorder %v118_v18, 1  ;;  %vm128_vm12 = vcmp.le.s32.totalorder %v118_v18, 16  ;;  %vm3242_vm13 = vmmov %vm3241_vm6 }
 0x16a   :  { %vm124_vm0 = vcmp.ge.s32.totalorder %v119_v20, 1  ;;  %vm129_vm4 = vcmp.le.s32.totalorder %v119_v20, 16  ;;  %vm133_vm3 = vmand %vm123_vm11, %vm128_vm12 }
 0x16b   :  { %vm134_vm14 = vmand %vm124_vm0, %vm129_vm4  ;;  %v2999_v35 = vsel %vm133_vm3, 1.0, %v2627_v0  ;;  %vm1149_vm0 = vcmask 521216   ;;  %vm3239_vm4 = vcmask 1040384   ;;  %vm3250_vm3 = vmmov 0  }
 0x16c   :  { %vm3243_vm15 = vmmov %vm3241_vm6  ;;  %v3006_v42 = vsel %vm134_vm14, 1.0, %v2627_v0  ;;  %vm1410_vm14 = vcmask 518144  }
 0x16d   :  { %vm3244_vm1 = vmmov %vm3241_vm6 }
 0x16e   :  { %vm3245_vm8 = vmmov %vm3244_vm1 }
 0x16f   :  { %vm135_vm9 = vmand %vm125_vm2, %vm130_vm7 }
 0x170   :  { %vm3246_vm10 = vmmov %vm3244_vm1  ;;  %v3020_v59 = vsel %vm135_vm9, 1.0, %v2627_v0 }
 0x171   :  { %vm3247_vm11 = vmmov %vm3244_vm1 }
 0x172   :  { %vm3248_vm12 = vmmov %vm3244_vm1 }
 0x173   :  { %vm3249_vm5 = vmmov %vm3244_vm1 }
 0x174   :  { %vm3253_vm7 = vmmov %vm3244_vm1 }
 0x175   :  { %vm3255_vm9 = vmmov %vm3244_vm1 }
 0x229   :  { %v2983_v21 = vpop.f32.mrb[0].mxu1 }
 0x22a   :  { %v1137_v23 = vmul.f32 %v2981_v19, %v2983_v21  ;;  %v2377_v24 = vpop.f32.mrb[1].mxu1 }
 0x22b   :  { %v2990_v26 = vpop.f32.mrb[2].mxu1 }
 0x22c   :  { %v1158_v27 = vmul.f32 %v1137_v23, %v2983_v21  ;;  %v1138_v28 = vmul.f32 %v2986_v22, %v2990_v26  ;;  %v2378_v29 = vpop.f32.mrb[3].mxu1  ;;  %v1142_v30 = vsel %vm3241_vm6, %v1137_v23, 0.0  ;;  %vm1264_vm6 = vcmask 31744  }
 0x22e   :  { %v1143_v31 = vsel %vm3242_vm13, %v1138_v28, 0.0  ;;  %v1159_v32 = vmul.f32 %v1138_v28, %v2990_v26  ;;  %v1163_v36 = vsel %vm3243_vm15, %v1158_v27, 0.0  ;;  %vm1405_vm13 = vcmask 519168  }
 0x22f   :  { %v1144_v33 = vadd.f32 %v1143_v31, %v1142_v30  ;;  %vm3251_vm15 = vsmask.f32 7424 }
 0x230   :  { %v1164_v37 = vsel %vm3244_vm1, %v1159_v32, 0.0  ;;  %vm3252_vm2 = vmmov %vm3251_vm15 }
 0x231   :  { %v1165_v38 = vadd.f32 %v1164_v37, %v1163_v36  ;;  %v3003_v39 = vpop.f32.mrb[4].mxu1  ;;  %v2607_v36 = vld [vmem:[%s3230_s6 + $0x28] sm:$0xff]   ;;  %v2608_v37 = vld [vmem:[%s3230_s6 + $0x30] sm:$0xff]  }
 0x232   :  { %v1139_v43 = vmul.f32 %v2999_v35, %v3003_v39  ;;  %v2381_v44 = vpop.f32.mrb[5].mxu1 }
 0x233   :  { %v3010_v45 = vpop.f32.mrb[6].mxu1 }
 0x234   :  { %v1145_v47 = vsel %vm3245_vm8, %v1139_v43, 0.0  ;;  %v1160_v48 = vmul.f32 %v1139_v43, %v3003_v39  ;;  %v1140_v50 = vmul.f32 %v3006_v42, %v3010_v45  ;;  %v2382_v51 = vpop.f32.mrb[7].mxu1  ;;  %v3052_v43 = vsub.s32 0, %v2941_v40  ;;  %vm3254_vm8 = vmmov %vm3244_vm1 }
 0x235   :  { %v1146_v52 = vadd.f32 %v1145_v47, %v1144_v33  ;;  %v2606_v33 = vld [vmem:[%s3230_s6 + $0x20] sm:$0xff]  }
 0x236   :  { %v1166_v53 = vsel %vm3246_vm10, %v1160_v48, 0.0  ;;  %v1147_v54 = vsel %vm3247_vm11, %v1140_v50, 0.0  ;;  %v1161_v56 = vmul.f32 %v1140_v50, %v3010_v45  ;;  %vm3256_vm10 = vmmov %vm3244_vm1 }
 0x237   :  { %v1167_v57 = vadd.f32 %v1166_v53, %v1165_v38  ;;  %v1148_v58 = vadd.f32 %v1147_v54, %v1146_v52  ;;  %v2609_v38 = vld [vmem:[%s3230_s6 + $0x38] sm:$0xff]   ;;  %vm3257_vm11 = vmmov %vm3244_vm1 }
 0x238   :  { %v1168_v60 = vsel %vm3248_vm12, %v1161_v56, 0.0  ;;  %vm3258_vm12 = vcmask 1046528  }
 0x239   :  { %v1169_v61 = vadd.f32 %v1168_v60, %v1167_v57  ;;  %v3023_v62 = vpop.f32.mrb[8].mxu1 }
 0x23a   :  { %v1141_v63 = vmul.f32 %v3020_v59, %v3023_v62  ;;  %v2385_v1 = vpop.f32.mrb[9].mxu1 }
 0x23b   :  { %v1126_v2 = vpop.f32.mrb[10].mxu1 }
 0x23c   :  { %v1150_v3 = vsel %vm1149_vm0, %v1141_v63, 0.0  ;;  %v1162_v4 = vmul.f32 %v1141_v63, %v3023_v62  ;;  %v2386_v5 = vpop.f32.mrb[11].mxu1 }
 0x23d   :  { %v1151_v6 = vadd.f32 %v1150_v3, %v1148_v58  ;;  %v1134_v58 = vld [vmem:[%s3229_s5] sm:$0x1] }
 0x23e   :  { %v1170_v7 = vsel %vm1149_vm0, %v1162_v4, 0.0  ;;  %vm3259_vm0 = vmmov %vm3244_vm1 }
 0x23f   :  { %v1152_v8 = vrot.slane %v1151_v6, 4  ;;  %v1171_v9 = vadd.f32 %v1170_v7, %v1169_v61 }
 0x241   :  { %v1153_v10 = vadd.f32 %v1152_v8, %v1151_v6  ;;  %v1172_v11 = vrot.slane %v1171_v9, 4 }
 0x243   :  { %v1154_v12 = vrot.slane %v1153_v10, 2  ;;  %v1173_v13 = vadd.f32 %v1172_v11, %v1171_v9 }
 0x245   :  { %v1155_v14 = vadd.f32 %v1154_v12, %v1153_v10  ;;  %v1174_v15 = vrot.slane %v1173_v13, 2 }
 0x247   :  { %v1156_v16 = vrot.slane %v1155_v14, 1  ;;  %v1175_v17 = vadd.f32 %v1174_v15, %v1173_v13 }
 0x249   :  { %v1176_v18 = vrot.slane %v1175_v17, 1  ;;  %v1157_v20 = vadd.f32 %v1156_v16, %v1155_v14 }
 0x24b   :  { %v1177_v23 = vadd.f32 %v1176_v18, %v1175_v17 }
 0x24d   :  { %v1179_v24 = vsel %vm3239_vm4, %v1157_v20, %v1177_v23 }
 0x24e   :  { %2390 = vmatmul.mubr.msk.f32.vlgmr.msra.gmra.mrb[12].mxu1 %vm3249_vm5, %v1179_v24  ;;  %vm3260_vm5 = vmmov %vm3258_vm12 }
 0x24f   :  { %2459 = vmatprep.mubr.msk.f32.mxu1 %vm3250_vm3, %v2627_v0 }
 0x321   :  { %v1252_v25 = vpop.f32.mrb[12].mxu1 }
 0x322   :  { %v1256_v27 = vmul.f32 0.001953125, %v1252_v25  ;;  %v2391_v28 = vpop.f32.mrb[13].mxu1 }
 0x324   :  { %v1257_v29 = vmul.f32 %v1256_v27, %v1256_v27 }
 0x326   :  { %v1259_v30 = vrot.slane %v1257_v29, 7 }
 0x328   :  { %v1261_v31 = vsub.f32 %v1256_v27, %v1259_v30 }
 0x32a   :  { %v1262_v32 = vmax.f32 %v1261_v31, 0.0  ;;  %v2612_v31 = vld [vmem:[%s3230_s6] sm:$0xff]  }
 0x32c   :  { %v1263_v34 = vsel %vm3239_vm4, %v1256_v27, %v1262_v32 }
 0x32d   :  { %2395 = vmatmul.mubr.msk.f32.vlgmr.msra.gmra.mrb[36].mxu0 %vm1264_vm6, %v1263_v34  ;;  %vm3261_vm6 = vmmov %vm3259_vm0 }
 0x32e   :  { %2405 = vmatprep.mubr.msk.bf16.mxu0 %vm3250_vm3, %v2627_v0  ;;  %2398 = vmatpush3.bf16.msra.mxu0 %v2606_v33  ;;  %v2613_v33 = vld [vmem:[%s3230_s6 + $0x8] sm:$0xff]  }
 0x32f   :  { %2399 = vmatprep.subr.bf16.mxu0 %v2627_v0 }
 0x332   :  { %2400 = vmatpush3.bf16.msra.mxu0 %v2607_v36 }
 0x333   :  { %2401 = vmatprep.subr.bf16.mxu0 %v2627_v0 }
 0x336   :  { %2402 = vmatpush3.bf16.msra.mxu0 %v2608_v37 }
 0x337   :  { %2403 = vmatprep.subr.bf16.mxu0 %v2627_v0 }
 0x33a   :  { %2404 = vmatpush3.bf16.msra.mxu0 %v2609_v38 }
 0x33b   :  { %2417 = vmatprep.subr.bf16.mxu0 %v2627_v0 }
 0x400   :  { %v1337_v44 = vpop.f32.mrb[36].mxu0 }
 0x401   :  { %v1344_v47 = vrot.slane %v1337_v44, %v3052_v43  ;;  %v1350_v48 = vadd.f32 1e-05, %v1337_v44  ;;  %v2396_v50 = vpop.f32.mrb[37].mxu0 }
 0x402   :  { %v2616_v50 = vld [vmem:[%s3230_s6 + $0x18] sm:$0xff]  }
 0x403   :  { %v1345_v51 = vsub.f32 %v2983_v21, %v1344_v47  ;;  %v1346_v52 = vsub.f32 %v2990_v26, %v1344_v47  ;;  %v1347_v53 = vsub.f32 %v3003_v39, %v1344_v47  ;;  %v1348_v54 = vsub.f32 %v3010_v45, %v1344_v47  ;;  %v2105_v21 = vld [vmem:[%s3229_s5 + $0x1] ss:$0 sm:$0xff] }
 0x404   :  { %v1349_v56 = vsub.f32 %v3023_v62, %v1344_v47  ;;  %2623 = vrsqrt.f32 %v1350_v48  ;;  %v2615_v47 = vld [vmem:[%s3230_s6 + $0x10] sm:$0xff]  }
 0x40e   :  { %v2624_v57 = vpop.eup %2623 }
 0x40f   :  { %v1353_v60 = vrot.slane %v2624_v57, 1  ;;  %v2621_v57 = vld [vmem:[%s3230_s6 + $0x58] sm:$0xff]  }
 0x411   :  { %v1355_v61 = vmul.f32 %v1353_v60, %v1134_v58 }
 0x413   :  { %v1359_v63 = vrot.slane %v1355_v61, %v3052_v43 }
 0x415   :  { %v1360_v26 = vmul.f32 %v1359_v63, %v1345_v51  ;;  %v1361_v39 = vmul.f32 %v1359_v63, %v1346_v52  ;;  %v1362_v1 = vmul.f32 %v1359_v63, %v1347_v53  ;;  %v1363_v45 = vmul.f32 %v1359_v63, %v1348_v54  ;;  %v2617_v53 = vld [vmem:[%s3230_s6 + $0x40] sm:$0xff]   ;;  %v2618_v54 = vld [vmem:[%s3230_s6 + $0x48] sm:$0xff]  }
 0x416   :  { %v1364_v2 = vmul.f32 %v1359_v63, %v1349_v56  ;;  %v2619_v56 = vld [vmem:[%s3230_s6 + $0x50] sm:$0xff]  }
 0x417   :  { %v1369_v62 = vadd.f32 %v2105_v21, %v1360_v26  ;;  %v1370_v3 = vadd.f32 %v2105_v21, %v1361_v39  ;;  %v1371_v4 = vadd.f32 %v2105_v21, %v1362_v1  ;;  %v1372_v5 = vadd.f32 %v2105_v21, %v1363_v45  ;;  %v3135_v45 = vld [vmem:[%s3231_s7 + $0x2] sm:$0xff] }
 0x418   :  { %v1373_v6 = vadd.f32 %v2105_v21, %v1364_v2  ;;  %2458 = vmatpush3.xpose.msra.mxu1 %v3135_v45 }
 0x419   :  { %v1374_v7 = vmax.f32 %v1369_v62, 0.0  ;;  %v1375_v8 = vmax.f32 %v1370_v3, 0.0  ;;  %v1376_v9 = vmax.f32 %v1371_v4, 0.0  ;;  %v1377_v10 = vmax.f32 %v1372_v5, 0.0  ;;  %2462 = vmatprep.subr.mxu1 %v2627_v0 }
 0x41a   :  { %v1378_v11 = vmax.f32 %v1373_v6, 0.0  ;;  %v3140_v2 = vmul.u32.u64.low 3817748708, %v2941_v40  ;;  %v3141_v62 = vmul.u32.u64.high 3817748708, %v2941_v40, %v3140_v2 }
 0x41b   :  { %v1379_v12 = vmul.f32 %v2981_v19, %v1374_v7  ;;  %v1380_v13 = vmul.f32 %v2986_v22, %v1375_v8  ;;  %v1381_v14 = vmul.f32 %v2999_v35, %v1376_v9  ;;  %v1382_v15 = vmul.f32 %v3006_v42, %v1377_v10 }
 0x41c   :  { %v1383_v16 = vmul.f32 %v3020_v59, %v1378_v11  ;;  %v3144_v3 = vmul.u32.u64.low 3817748708, %v2944_v41  ;;  %v3145_v4 = vmul.u32.u64.high 3817748708, %v2944_v41, %v3144_v3  ;;  %v152_v5 = vshrl.u32 %v3141_v62, 4 }
 0x41d   :  { %v2155_v17 = vpack.c.bf16 %v1379_v12, %v1379_v12  ;;  %v2156_v18 = vpack.c.bf16 %v1380_v13, %v1380_v13  ;;  %v2157_v20 = vpack.c.bf16 %v1381_v14, %v1381_v14  ;;  %v2158_v23 = vpack.c.bf16 %v1382_v15, %v1382_v15 }
 0x41e   :  { %v2159_v24 = vpack.c.bf16 %v1383_v16, %v1383_v16  ;;  %v3149_v6 = vmul.u32.u64.low 3817748708, %v2952_v46  ;;  %v3150_v7 = vmul.u32.u64.high 3817748708, %v2952_v46, %v3149_v6  ;;  %v163_v8 = vshrl.u32 %v3145_v4, 4 }
 0x41f   :  { %1406 = vst.msk [vmem:[#allocation2] sm:$0xf] %vm1405_vm13, %v2155_v17  ;;  %1407 = vst.msk [vmem:[#allocation2 + $0x4] sm:$0xf] %vm1405_vm13, %v2156_v18  ;;  %v3154_v9 = vmul.u32.u64.low 3817748708, %v2958_v49  ;;  %v3155_v10 = vmul.u32.u64.high 3817748708, %v2958_v49, %v3154_v9 }
 0x420   :  { %1408 = vst.msk [vmem:[#allocation2 + $0x8] sm:$0xf] %vm1405_vm13, %v2157_v20  ;;  %1409 = vst.msk [vmem:[#allocation2 + $0xc] sm:$0xf] %vm1405_vm13, %v2158_v23  ;;  %v153_v11 = vmul.u32 18, %v152_v5  ;;  %v164_v12 = vmul.u32 18, %v163_v8 }
 0x421   :  { %1411 = vst.msk [vmem:[#allocation2 + $0x10] sm:$0x7] %vm1410_vm14, %v2159_v24  ;;  %vm3262_vm13 = vmmov %vm3259_vm0  ;;  %v174_v14 = vshrl.u32 %v3150_v7, 4  ;;  %v3160_v15 = vmul.u32.u64.low 3817748708, %v2967_v55  ;;  %v3161_v16 = vmul.u32.u64.high 3817748708, %v2967_v55, %v3160_v15  ;;  %v185_v18 = vshrl.u32 %v3155_v10, 4 }
 0x422   :  { %v154_v13 = vsub.s32 %v2941_v40, %v153_v11  ;;  %v165_v17 = vsub.s32 %v2944_v41, %v164_v12 }
 0x423   :  { %v175_v20 = vmul.u32 18, %v174_v14  ;;  %v186_v24 = vmul.u32 18, %v185_v18 }
 0x424   :  { %vm201_vm14 = vcmp.ne.s32.totalorder %v154_v13, 0  ;;  %v216_v23 = vadd.s32 18, %v154_v13 }
 0x425   :  { %v176_v40 = vsub.s32 %v2952_v46, %v175_v20 }
 0x426   :  { %v1412_v19 = vld [vmem:[#allocation2] sm:$0xf]  ;;  %v1413_v22 = vld [vmem:[#allocation2 + $0x4] sm:$0xf] }
 0x427   :  { %v2119_v25 = vcombine.low %v1412_v19, %v1413_v22  ;;  %v2611_v35 = vld [vmem:[#allocation2 + $0x8] sm:$0xff]   ;;  %v1650_v58 = vld [vmem:[#allocation2] sm:$0xe]  ;;  %v217_v19 = vadd.s32 18, %v165_v17 }
 0x428   :  { %v1456_v42 = vshll.u32 %v2611_v35, 16  ;;  %v2614_v32 = vld [vmem:[#allocation2 + $0x10] ss:$0 sps:$4 sm:$0x77]   ;;  %v1460_v36 = vshrl.u32 %v2611_v35, 16  ;;  %v2145_v61 = vcombine.low %v1650_v58, %v1413_v22  ;;  %v1664_v21 = vrot.slane %v2611_v35, 1 }
 0x429   :  { %v1451_v27 = vshll.u32 %v2119_v25, 16  ;;  %v1449_v28 = vshrl.u32 %v2119_v25, 16  ;;  %v1464_v37 = vshll.u32 %v2614_v32, 16  ;;  %v1468_v51 = vshrl.u32 %v2614_v32, 16 }
 0x42a   :  { %v1458_v30 = vrot.slane %v1456_v42, 1  ;;  %v2620_v60 = vld [vmem:[#allocation2 + $0x10] ss:$0 sps:$4 sm:$0x33]   ;;  %v1663_v63 = vrot.slane %v2145_v61, 1  ;;  %v1666_v39 = vrot.slane %v2614_v32, 1 }
 0x42b   :  { %v1453_v59 = vrot.slane %v1451_v27, 1  ;;  %v1466_v44 = vrot.slane %v1464_v37, 1  ;;  %v196_v22 = vshrl.u32 %v3161_v16, 4  ;;  %v218_v42 = vadd.s32 18, %v176_v40 }
 0x42c   :  { %v1462_v38 = vor.u32 %v1460_v36, %v1458_v30  ;;  %v1665_v26 = vsel %vm3258_vm12, %v1663_v63, %v1664_v21  ;;  %v1667_v1 = vsel %vm3260_vm5, %v1664_v21, %v1666_v39 }
 0x42d   :  { %v1454_v29 = vor.u32 %v1453_v59, %v1449_v28  ;;  %v1470_v52 = vor.u32 %v1468_v51, %v1466_v44  ;;  %v197_v27 = vmul.u32 18, %v196_v22 }
 0x42e   :  { %v1467_v48 = vsel %vm3252_vm2, %v1462_v38, %v1466_v44  ;;  %vm207_vm2 = vcmp.lt.s32.totalorder %v165_v17, 0 }
 0x42f   :  { %v1459_v34 = vsel %vm3251_vm15, %v1454_v29, %v1458_v30  ;;  %vm206_vm15 = vcmp.lt.s32.totalorder %v154_v13, 0  ;;  %v198_v28 = vsub.s32 %v2967_v55, %v197_v27 }
 0x430   :  { %2406 = vmatmul.mubr.msk.bf16.vlgmr.msra.gmra.mrb[40].mxu0 %vm3244_vm1, %v1459_v34  ;;  %vm202_vm1 = vcmp.ne.s32.totalorder %v165_v17, 0 }
 0x431   :  { %2418 = vmatpush3.bf16.msra.mxu0 %v2612_v31  ;;  %2409 = vmatprep.mubr.msk.bf16.mxu0 %vm3250_vm3, %v2627_v0 }
 0x432   :  { %2419 = vmatprep.subr.bf16.mxu0 %v2627_v0 }
 0x435   :  { %2420 = vmatpush3.bf16.msra.mxu0 %v2613_v33  ;;  %v220_v33 = vadd.s32 18, %v198_v28 }
 0x436   :  { %2421 = vmatprep.subr.bf16.mxu0 %v2627_v0 }
 0x438   :  { %2410 = vmatmul.mubr.msk.bf16.gmra.mrb[44].mxu0 %vm3253_vm7, %v1467_v48  ;;  %vm211_vm7 = vmand %vm206_vm15, %vm201_vm14 }
 0x439   :  { %2422 = vmatpush3.bf16.msra.mxu0 %v2615_v47  ;;  %2413 = vmatprep.mubr.msk.bf16.mxu0 %vm3250_vm3, %v2627_v0 }
 0x43a   :  { %2423 = vmatprep.subr.bf16.mxu0 %v2627_v0 }
 0x43d   :  { %2424 = vmatpush3.bf16.msra.mxu0 %v2616_v50 }
 0x43e   :  { %2437 = vmatprep.subr.bf16.mxu0 %v2627_v0 }
 0x440   :  { %2414 = vmatmul.mubr.msk.bf16.gmra.mrb[48].mxu0 %vm3254_vm8, %v1470_v52  ;;  %vm212_vm8 = vmand %vm207_vm2, %vm202_vm1 }
 0x441   :  { %2425 = vmatprep.mubr.msk.bf16.mxu0 %vm3250_vm3, %v2627_v0  ;;  %v222_v41 = vsel %vm212_vm8, %v217_v19, %v165_v17  ;;  %vm210_vm8 = vcmp.lt.s32.totalorder %v198_v28, 0 }
 0x448   :  { %2426 = vmatmul.mubr.msk.bf16.vlgmr.msra.gmra.mrb[40].mxu0 %vm3255_vm9, %v2119_v25  ;;  %v221_v25 = vsel %vm211_vm7, %v216_v23, %v154_v13  ;;  %vm203_vm9 = vcmp.ne.s32.totalorder %v176_v40, 0  ;;  %vm205_vm7 = vcmp.ne.s32.totalorder %v198_v28, 0 }
 0x449   :  { %2438 = vmatpush3.bf16.msra.mxu0 %v2617_v53  ;;  %2429 = vmatprep.mubr.msk.bf16.mxu0 %vm3250_vm3, %v2627_v0  ;;  %vm231_vm12 = vcmp.le.s32.totalorder %v221_v25, 16 }
 0x44a   :  { %2439 = vmatprep.subr.bf16.mxu0 %v2627_v0 }
 0x44d   :  { %2440 = vmatpush3.bf16.msra.mxu0 %v2618_v54 }
 0x44e   :  { %2441 = vmatprep.subr.bf16.mxu0 %v2627_v0 }
 0x450   :  { %2430 = vmatmul.mubr.msk.bf16.gmra.mrb[44].mxu0 %vm3256_vm10, %v2611_v35  ;;  %v187_v35 = vsub.s32 %v2958_v49, %v186_v24  ;;  %vm208_vm10 = vcmp.lt.s32.totalorder %v176_v40, 0 }
 0x451   :  { %2442 = vmatpush3.bf16.msra.mxu0 %v2619_v56  ;;  %2433 = vmatprep.mubr.msk.bf16.mxu0 %vm3250_vm3, %v2627_v0  ;;  %vm213_vm14 = vmand %vm208_vm10, %vm203_vm9 }
 0x452   :  { %2443 = vmatprep.subr.bf16.mxu0 %v2627_v0  ;;  %vm209_vm5 = vcmp.lt.s32.totalorder %v187_v35, 0  ;;  %v219_v46 = vadd.s32 18, %v187_v35  ;;  %v223_v59 = vsel %vm213_vm14, %v218_v42, %v176_v40  ;;  %vm3265_vm14 = vcmask 1040384  }
 0x453   :  { %vm228_vm4 = vcmp.ge.s32.totalorder %v223_v59, 1 }
 0x455   :  { %2444 = vmatpush3.bf16.msra.mxu0 %v2621_v57 }
 0x458   :  { %2434 = vmatmul.mubr.msk.bf16.gmra.mrb[48].mxu0 %vm3257_vm11, %v2620_v60  ;;  %vm226_vm11 = vcmp.ge.s32.totalorder %v221_v25, 1 }
 0x459   :  { %2445 = vmatprep.mubr.msk.bf16.mxu0 %vm3250_vm3, %v2627_v0  ;;  %vm236_vm15 = vmand %vm226_vm11, %vm231_vm12 }
 0x45a   :  { %v2002_v49 = vsel %vm236_vm15, 1.0, %v2627_v0  ;;  %vm215_vm11 = vmand %vm210_vm8, %vm205_vm7  ;;  %vm3266_vm15 = vmmov 0  }
 0x45b   :  { %v225_v48 = vsel %vm215_vm11, %v220_v33, %v198_v28 }
 0x460   :  { %2446 = vmatmul.mubr.msk.bf16.vlgmr.msra.gmra.mrb[40].mxu0 %vm3259_vm0, %v1665_v26  ;;  %vm204_vm0 = vcmp.ne.s32.totalorder %v187_v35, 0 }
 0x461   :  { %2449 = vmatprep.mubr.msk.bf16.mxu0 %vm3250_vm3, %v2627_v0  ;;  %vm214_vm1 = vmand %vm209_vm5, %vm204_vm0  ;;  %vm230_vm5 = vcmp.ge.s32.totalorder %v225_v48, 1 }
 0x462   :  { %v224_v29 = vsel %vm214_vm1, %v219_v46, %v187_v35  ;;  %vm1876_vm1 = vcmask 64512  }
 0x463   :  { %vm229_vm9 = vcmp.ge.s32.totalorder %v224_v29, 1  ;;  %vm234_vm10 = vcmp.le.s32.totalorder %v224_v29, 16 }
 0x464   :  { %vm239_vm0 = vmand %vm229_vm9, %vm234_vm10 }
 0x465   :  { %v2005_v53 = vsel %vm239_vm0, 1.0, %v2627_v0 }
 0x468   :  { %2450 = vmatmul.mubr.msk.bf16.gmra.mrb[44].mxu0 %vm3261_vm6, %v1667_v1  ;;  %vm227_vm6 = vcmp.ge.s32.totalorder %v222_v41, 1 }
 0x469   :  { %2453 = vmatprep.mubr.msk.bf16.mxu0 %vm3250_vm3, %v2627_v0  ;;  %vm233_vm3 = vcmp.le.s32.totalorder %v223_v59, 16 }
 0x46a   :  { %vm238_vm12 = vmand %vm228_vm4, %vm233_vm3  ;;  %vm3263_vm3 = vcmask 1043456  }
 0x46b   :  { %v2004_v50 = vsel %vm238_vm12, 1.0, %v2627_v0 }
 0x470   :  { %2454 = vmatmul.mubr.msk.bf16.gmra.mrb[48].mxu0 %vm3262_vm13, %v1666_v39  ;;  %vm232_vm13 = vcmp.le.s32.totalorder %v222_v41, 16 }
 0x471   :  { %vm237_vm2 = vmand %vm227_vm6, %vm232_vm13  ;;  %vm235_vm6 = vcmp.le.s32.totalorder %v225_v48, 16 }
 0x472   :  { %v2003_v31 = vsel %vm237_vm2, 1.0, %v2627_v0  ;;  %vm240_vm4 = vmand %vm230_vm5, %vm235_vm6 }
 0x473   :  { %v2006_v1 = vsel %vm240_vm4, 1.0, %v2627_v0  ;;  %vm3264_vm13 = vmmov %vm3263_vm3 }
 0x474   :  { %vm3267_vm2 = vmmov %vm3265_vm14 }
 0x533   :  { %v3170_v30 = vpop.f32.mrb[40].mxu0 }
 0x534   :  { %v1765_v32 = vmul.f32 %v2002_v49, %v3170_v30  ;;  %v2447_v34 = vpop.f32.mrb[41].mxu0 }
 0x535   :  { %v3174_v36 = vpop.f32.mrb[42].mxu0 }
 0x536   :  { %v1766_v55 = vmul.f32 %v2003_v31, %v3174_v36  ;;  %v2448_v37 = vpop.f32.mrb[43].mxu0  ;;  %v1781_v38 = vmul.f32 %v1765_v32, %v3170_v30 }
 0x538   :  { %v1770_v44 = vadd.f32 %v1766_v55, %v1765_v32  ;;  %v1782_v47 = vmul.f32 %v1766_v55, %v3174_v36 }
 0x53a   :  { %v1786_v51 = vadd.f32 %v1782_v47, %v1781_v38  ;;  %v1762_v38 = vld [vmem:[%s3231_s7] sm:$0x1] }
 0x53b   :  { %v3180_v52 = vpop.f32.mrb[44].mxu0 }
 0x53c   :  { %v1767_v54 = vmul.f32 %v2004_v50, %v3180_v52  ;;  %v2451_v56 = vpop.f32.mrb[45].mxu0 }
 0x53d   :  { %v3184_v57 = vpop.f32.mrb[46].mxu0 }
 0x53e   :  { %v1771_v58 = vadd.f32 %v1770_v44, %v1767_v54  ;;  %v1783_v60 = vmul.f32 %v1767_v54, %v3180_v52  ;;  %v1768_v61 = vmul.f32 %v2005_v53, %v3184_v57  ;;  %v2452_v63 = vpop.f32.mrb[47].mxu0 }
 0x540   :  { %v1787_v21 = vadd.f32 %v1786_v51, %v1783_v60  ;;  %v1772_v26 = vadd.f32 %v1771_v58, %v1768_v61  ;;  %v1784_v39 = vmul.f32 %v1768_v61, %v3184_v57 }
 0x542   :  { %v1788_v2 = vadd.f32 %v1787_v21, %v1784_v39 }
 0x543   :  { %v1751_v62 = vpop.f32.mrb[48].mxu0 }
 0x544   :  { %v1769_v3 = vmul.f32 %v2006_v1, %v1751_v62  ;;  %v2455_v4 = vpop.f32.mrb[49].mxu0 }
 0x545   :  { %v1754_v5 = vpop.f32.mrb[50].mxu0 }
 0x546   :  { %v1773_v6 = vsel %vm3263_vm3, %v1769_v3, 0.0  ;;  %v1785_v7 = vmul.f32 %v1769_v3, %v1751_v62  ;;  %v2456_v8 = vpop.f32.mrb[51].mxu0 }
 0x547   :  { %v1774_v9 = vadd.f32 %v1773_v6, %v1772_v26 }
 0x548   :  { %v1789_v10 = vsel %vm3264_vm13, %v1785_v7, 0.0 }
 0x549   :  { %v1775_v11 = vrot.slane %v1774_v9, 4  ;;  %v1790_v12 = vadd.f32 %v1789_v10, %v1788_v2 }
 0x54b   :  { %v1776_v13 = vadd.f32 %v1775_v11, %v1774_v9  ;;  %v1791_v14 = vrot.slane %v1790_v12, 4 }
 0x54d   :  { %v1777_v15 = vrot.slane %v1776_v13, 2  ;;  %v1792_v16 = vadd.f32 %v1791_v14, %v1790_v12 }
 0x54f   :  { %v1793_v17 = vrot.slane %v1792_v16, 2  ;;  %v1778_v18 = vadd.f32 %v1777_v15, %v1776_v13 }
 0x551   :  { %v1779_v20 = vrot.slane %v1778_v18, 1  ;;  %v1794_v23 = vadd.f32 %v1793_v17, %v1792_v16 }
 0x553   :  { %v1795_v24 = vrot.slane %v1794_v23, 1  ;;  %v1780_v19 = vadd.f32 %v1779_v20, %v1778_v18 }
 0x555   :  { %v1796_v40 = vadd.f32 %v1795_v24, %v1794_v23 }
 0x557   :  { %v1797_v22 = vsel %vm3265_vm14, %v1780_v19, %v1796_v40 }
 0x558   :  { %2460 = vmatmul.mubr.f32.vlgmr.msra.gmra.mrb[14].mxu1 %v1797_v22 }
 0x559   :  { %2463 = vmatpush3.msra.mxu1 %v3135_v45  ;;  %2464 = vmatprep.mubr.msk.f32.mxu1 %vm3266_vm15, %v2627_v0 }
 0x62b   :  { %v1864_v25 = vpop.f32.mrb[14].mxu1 }
 0x62c   :  { %v1868_v35 = vmul.f32 0.001953125, %v1864_v25  ;;  %v2461_v41 = vpop.f32.mrb[15].mxu1 }
 0x62e   :  { %v1869_v27 = vmul.f32 %v1868_v35, %v1868_v35 }
 0x630   :  { %v1871_v42 = vrot.slane %v1869_v27, 7 }
 0x632   :  { %v1873_v46 = vsub.f32 %v1868_v35, %v1871_v42 }
 0x634   :  { %v1874_v28 = vmax.f32 %v1873_v46, 0.0 }
 0x636   :  { %v1875_v59 = vsel %vm3267_vm2, %v1868_v35, %v1874_v28 }
 0x637   :  { %2465 = vmatmul.mubr.msk.f32.vlgmr.msra.gmra.mrb[16].mxu1 %vm1876_vm1, %v1875_v59 }
 0x70a   :  { %v1946_v49 = vpop.f32.mrb[16].mxu1 }
 0x70b   :  { %v1953_v29 = vrot.slane %v1946_v49, %v3052_v43  ;;  %v1959_v31 = vadd.f32 1e-05, %v1946_v49  ;;  %v2466_v32 = vpop.f32.mrb[17].mxu1 }
 0x70d   :  { %v1954_v45 = vsub.f32 %v3170_v30, %v1953_v29  ;;  %v1955_v0 = vsub.f32 %v3174_v36, %v1953_v29  ;;  %v1956_v34 = vsub.f32 %v3180_v52, %v1953_v29  ;;  %v1957_v33 = vsub.f32 %v3184_v57, %v1953_v29  ;;  %v2154_v30 = vld [vmem:[%s3231_s7 + $0x1] ss:$0 sm:$0xff] }
 0x70e   :  { %v1958_v55 = vsub.f32 %v1751_v62, %v1953_v29  ;;  %2625 = vrsqrt.f32 %v1959_v31 }
 0x718   :  { %v2626_v37 = vpop.eup %2625 }
 0x719   :  { %v1962_v44 = vrot.slane %v2626_v37, 1 }
 0x71b   :  { %v1964_v47 = vmul.f32 %v1962_v44, %v1762_v38 }
 0x71d   :  { %v1968_v48 = vrot.slane %v1964_v47, %v3052_v43 }
 0x71f   :  { %v1969_v36 = vmul.f32 %v1968_v48, %v1954_v45  ;;  %v1970_v50 = vmul.f32 %v1968_v48, %v1955_v0  ;;  %v1971_v51 = vmul.f32 %v1968_v48, %v1956_v34  ;;  %v1972_v52 = vmul.f32 %v1968_v48, %v1957_v33 }
 0x720   :  { %v1973_v53 = vmul.f32 %v1968_v48, %v1958_v55 }
 0x721   :  { %v1978_v54 = vadd.f32 %v2154_v30, %v1969_v36  ;;  %v1979_v56 = vadd.f32 %v2154_v30, %v1970_v50  ;;  %v1980_v57 = vadd.f32 %v2154_v30, %v1971_v51  ;;  %v1981_v58 = vadd.f32 %v2154_v30, %v1972_v52 }
 0x722   :  { %v1982_v60 = vadd.f32 %v2154_v30, %v1973_v53 }
 0x723   :  { %v1983_v61 = vmax.f32 %v1978_v54, 0.0  ;;  %v1984_v63 = vmax.f32 %v1979_v56, 0.0  ;;  %v1985_v21 = vmax.f32 %v1980_v57, 0.0  ;;  %v1986_v26 = vmax.f32 %v1981_v58, 0.0 }
 0x724   :  { %v1987_v39 = vmax.f32 %v1982_v60, 0.0 }
 0x725   :  { %1988 = vst [vmem:[%s3232_s8] sm:$0xff] %v1983_v61  ;;  %1989 = vst [vmem:[%s3232_s8 + $0x8] sm:$0xff] %v1984_v63 }
 0x726   :  { %1990 = vst [vmem:[%s3232_s8 + $0x10] sm:$0xff] %v1985_v21  ;;  %1991 = vst [vmem:[%s3232_s8 + $0x18] sm:$0xff] %v1986_v26 }
 0x727   :  { %1992 = vst [vmem:[%s3232_s8 + $0x20] sm:$0xf] %v1987_v39 }

</bundles_post_ra>
